<compile_context>
chip_gen: v6e
topology: v6e:2x2x1
jax: 0.10.0
libtpu: 0.0.40
codegen_flags: <defaults>
</compile_context>

<pallas_src>
import jax
import jax.numpy as jnp
from jax import lax
from jax.experimental import pallas as pl
from jax.experimental.pallas import tpu as pltpu

NEG_SLOPE = 0.2  # nn.LeakyReLU(0.2)


def _leaky(v):
    # Exact LeakyReLU for slope < 1: max(v, slope*v).
    return jnp.maximum(v, NEG_SLOPE * v)


# ---------------------------------------------------------------------------
# Kernel: one batch tile of TB samples, batch on the lane axis everywhere.
# ---------------------------------------------------------------------------
def convnet_kernel(x_ref,
                   w1_ref, b1_ref,
                   w2_ref, b2_ref,
                   w3_ref, b3_ref,
                   m1_ref, bl1_ref, wl2_ref, bl2_ref,
                   out_ref):
    h = x_ref[...]  # (L, TB)

    def stage(h, w_ref, b_ref):
        # Conv1d + bias + LeakyReLU + MaxPool1d(2) as ONE matmul:
        # rows [0:Mp) of the stacked operator produce the "even" pooled taps,
        # rows [Mp:2Mp) the "odd" ones (pool selectors folded host-side).
        w = w_ref[...]
        mp = w.shape[0] // 2                       # static, multiple of 8
        a = _leaky(jnp.dot(w, h, preferred_element_type=jnp.float32) + b_ref[...])
        return jnp.maximum(a[:mp], a[mp:])         # cheap VPU max on aligned halves

    h = stage(h, w1_ref, b1_ref)
    h = stage(h, w2_ref, b2_ref)
    h = stage(h, w3_ref, b3_ref)

    # AdaptiveAvgPool1d(1) + Flatten + Linear1 fused into m1 (host-side).
    z = _leaky(jnp.dot(m1_ref[...], h, preferred_element_type=jnp.float32) + bl1_ref[...])
    # Linear2 -> lane-dense (2, TB) store.
    out_ref[...] = jnp.dot(wl2_ref[...], z, preferred_element_type=jnp.float32) + bl2_ref[...]


# ---------------------------------------------------------------------------
# Host-side operator construction (runs in XLA outside the kernel, once).
# ---------------------------------------------------------------------------
def _rup(n, m):
    return ((n + m - 1) // m) * m


def _dense_conv_op(w, lin):
    """Conv1d weight (Cout, Cin, K) -> dense (Cout, Lout, Cin*Lin) operator."""
    cout, cin, k = w.shape
    lout = lin - k + 1
    t = jnp.arange(lout)[:, None, None]
    kk = jnp.arange(k)[None, :, None]
    col = jnp.arange(lin)[None, None, :]
    shift = (col == t + kk).astype(w.dtype)            # (Lout, K, Lin)
    wd = jnp.einsum('oik,tkl->otil', w, shift)          # (Cout, Lout, Cin, Lin)
    return wd.reshape(cout, lout, cin * lin)


def _stage_op(w, b, lin, col_pad, halfrow_pad):
    """Fused Conv1d+LeakyReLU+MaxPool1d(2) stacked operator.

    Returns Ws (2*halfrow_pad, col_pad) and Bs (2*halfrow_pad, 1) such that,
    with a = leaky(Ws @ h + Bs), max(a[:halfrow_pad], a[halfrow_pad:]) is the
    stage output.  Padded rows have zero weights/bias -> exactly zero output,
    matching the zero-padded columns of the next stage's operator.
    """
    cout, cin, k = w.shape
    lout = lin - k + 1
    pout = lout // 2                                    # PyTorch floor semantics
    wd = _dense_conv_op(w, lin)                         # (Cout, Lout, Cin*Lin)
    bd = jnp.broadcast_to(b[:, None], (cout, lout))
    we = wd[:, 0:2 * pout:2].reshape(cout * pout, cin * lin)   # even taps
    wo = wd[:, 1:2 * pout:2].reshape(cout * pout, cin * lin)   # odd taps
    be = bd[:, 0:2 * pout:2].reshape(cout * pout, 1)
    bo = bd[:, 1:2 * pout:2].reshape(cout * pout, 1)
    m = cout * pout
    padw = lambda a: jnp.pad(a, ((0, halfrow_pad - m), (0, col_pad - cin * lin)))
    padb = lambda a: jnp.pad(a, ((0, halfrow_pad - m), (0, 0)))
    ws = jnp.concatenate([padw(we), padw(wo)], axis=0)
    bs = jnp.concatenate([padb(be), padb(bo)], axis=0)
    return ws, bs


def _avg_op(c, lin, dtype=jnp.float32):
    """(c, c*lin) operator computing per-channel mean (AdaptiveAvgPool1d(1))."""
    r = jnp.arange(c)
    q = jnp.arange(c * lin)
    return (r[:, None] == (q // lin)[None, :]).astype(dtype) / lin


def build_operators(p, L):
    """Build all dense per-stage operators once (reused across forward calls)."""
    L1 = L - 2; P1 = L1 // 2
    L2 = P1 - 2; P2 = L2 // 2
    L3 = P2 - 2; P3 = L3 // 2
    assert P3 >= 1, "input too short for three conv+pool stages"

    w1s, b1s = _stage_op(p["w1"], p["b1"], L,  L,                  _rup(4 * P1, 8))
    w2s, b2s = _stage_op(p["w2"], p["b2"], P1, w1s.shape[0] // 2,  _rup(16 * P2, 8))
    w3s, b3s = _stage_op(p["w3"], p["b3"], P2, w2s.shape[0] // 2,  _rup(32 * P3, 8))

    avg = _avg_op(32, P3)                                       # (32, 32*P3)
    avg = jnp.pad(avg, ((0, 0), (0, w3s.shape[0] // 2 - 32 * P3)))
    m1 = p["wl1"] @ avg                                          # fused avgpool+flatten+linear1
    bl1 = p["bl1"].reshape(-1, 1)
    wl2 = p["wl2"]
    bl2 = p["bl2"].reshape(-1, 1)
    return (w1s, b1s, w2s, b2s, w3s, b3s, m1, bl1, wl2, bl2)


def init_params(key):
    """Deterministic PyTorch-default-style (uniform +/- 1/sqrt(fan_in)) init."""
    ks = jax.random.split(key, 10)

    def u(k, shape, fan_in):
        bound = 1.0 / (fan_in ** 0.5)
        return jax.random.uniform(k, shape, jnp.float32, -bound, bound)

    return {
        "w1": u(ks[0], (4, 1, 3), 3),    "b1": u(ks[1], (4,), 3),
        "w2": u(ks[2], (16, 4, 3), 12),  "b2": u(ks[3], (16,), 12),
        "w3": u(ks[4], (32, 16, 3), 48), "b3": u(ks[5], (32,), 48),
        "wl1": u(ks[6], (16, 32), 32),   "bl1": u(ks[7], (16,), 32),
        "wl2": u(ks[8], (2, 16), 16),    "bl2": u(ks[9], (2,), 16),
    }


# ---------------------------------------------------------------------------
# Forward: transpose/pad batch onto lanes, run the kernel over batch tiles.
# ---------------------------------------------------------------------------
def convnet_forward(x, ops, tb=None):
    # x: (B, 1, L) float32 (PyTorch NCL layout)
    B, C, L = x.shape
    assert C == 1
    if tb is None:
        # 128 lanes is the f32 floor for batch-on-lane (don't over-pad tiny B);
        # keep >= 2 grid steps for mid-size batches (v7x megacore), 256 wide
        # tiles once the batch is large enough to fill wider MXU passes.
        tb = 128 if B <= 256 else 256
    bp = _rup(B, tb)

    xt = jnp.transpose(x.reshape(B, L))            # (L, B) — batch on lanes
    xt = jnp.pad(xt, ((0, 0), (0, bp - B)))        # (L, bp)

    def full(a):  # whole-array resident VMEM block, constant across the grid
        return pl.BlockSpec(a.shape, lambda i, _nd=a.ndim: (0,) * _nd)

    in_specs = [pl.BlockSpec((L, tb), lambda i: (0, i))] + [full(a) for a in ops]

    out = pl.pallas_call(
        convnet_kernel,
        out_shape=jax.ShapeDtypeStruct((2, bp), jnp.float32),
        grid=(bp // tb,),
        in_specs=in_specs,
        out_specs=pl.BlockSpec((2, tb), lambda i: (0, i)),   # lane-dense store
        compiler_params=pltpu.CompilerParams(dimension_semantics=("parallel",)),
    )(xt, *ops)

    return jnp.transpose(out[:, :B])   # (B, 2)


# ---------------------------------------------------------------------------
# Pure-JAX reference mirroring the PyTorch forward exactly.
# ---------------------------------------------------------------------------
def convnet_reference(x, p):
    act = lambda v: jnp.where(v > 0, v, NEG_SLOPE * v)

    def conv(h, w, b):
        y = lax.conv_general_dilated(h, w, (1,), "VALID",
                                     dimension_numbers=("NCH", "OIH", "NCH"))
        return y + b.reshape(1, -1, 1)

    def maxpool(h):
        return lax.reduce_window(h, -jnp.inf, lax.max, (1, 1, 2), (1, 1, 2), "VALID")

    h = maxpool(act(conv(x, p["w1"], p["b1"])))
    h = maxpool(act(conv(h, p["w2"], p["b2"])))
    h = maxpool(act(conv(h, p["w3"], p["b3"])))
    h = jnp.mean(h, axis=-1)                       # AdaptiveAvgPool1d(1) + Flatten
    h = act(h @ p["wl1"].T + p["bl1"])
    return h @ p["wl2"].T + p["bl2"]


if __name__ == "__main__":
    key = jax.random.PRNGKey(0)
    kx, kp = jax.random.split(key)

    B, L = 2, 64                                   # x: (2, 1, 64) NCL
    x = jax.random.normal(kx, (B, 1, L), jnp.float32)
    params = init_params(kp)

    ops = build_operators(params, L)               # hoisted: built once, reused
    fwd = jax.jit(convnet_forward)
    out = jax.block_until_ready(fwd(x, ops))

    ref = convnet_reference(x, params)
    assert out.shape == (B, 2)
    assert jnp.allclose(out, ref, atol=1e-4, rtol=1e-4), (out, ref)
    print("KERNEL_OK")
</pallas_src>

<mosaic_0001>
module attributes {stable_mosaic.version = 11 : i64} {
  func.func @convnet_kernel(%arg0: i32, %arg1: memref<64x128xf32, #tpu.memory_space<vmem>>, %arg2: memref<256x64xf32, #tpu.memory_space<vmem>>, %arg3: memref<256x1xf32, #tpu.memory_space<vmem>>, %arg4: memref<448x128xf32, #tpu.memory_space<vmem>>, %arg5: memref<448x1xf32, #tpu.memory_space<vmem>>, %arg6: memref<384x224xf32, #tpu.memory_space<vmem>>, %arg7: memref<384x1xf32, #tpu.memory_space<vmem>>, %arg8: memref<16x192xf32, #tpu.memory_space<vmem>>, %arg9: memref<16x1xf32, #tpu.memory_space<vmem>>, %arg10: memref<2x16xf32, #tpu.memory_space<vmem>>, %arg11: memref<2x1xf32, #tpu.memory_space<vmem>>, %arg12: memref<2x128xf32, #tpu.memory_space<vmem>>) attributes {dimension_semantics = [#tpu.dimension_semantics<parallel>], iteration_bounds = array<i64: 1>, scalar_prefetch = 0 : i64, scratch_operands = 0 : i64, tpu.core_type = #tpu.core_type<tc>, window_params = [{transform_indices = @transform_0, window_bounds = array<i64: 64, 128>}, {pipeline_mode = #tpu.pipeline_mode<synchronous>, transform_indices = @transform_1, window_bounds = array<i64: 256, 64>}, {pipeline_mode = #tpu.pipeline_mode<synchronous>, transform_indices = @transform_2, window_bounds = array<i64: 256, 1>}, {pipeline_mode = #tpu.pipeline_mode<synchronous>, transform_indices = @transform_3, window_bounds = array<i64: 448, 128>}, {pipeline_mode = #tpu.pipeline_mode<synchronous>, transform_indices = @transform_4, window_bounds = array<i64: 448, 1>}, {pipeline_mode = #tpu.pipeline_mode<synchronous>, transform_indices = @transform_5, window_bounds = array<i64: 384, 224>}, {pipeline_mode = #tpu.pipeline_mode<synchronous>, transform_indices = @transform_6, window_bounds = array<i64: 384, 1>}, {pipeline_mode = #tpu.pipeline_mode<synchronous>, transform_indices = @transform_7, window_bounds = array<i64: 16, 192>}, {pipeline_mode = #tpu.pipeline_mode<synchronous>, transform_indices = @transform_8, window_bounds = array<i64: 16, 1>}, {pipeline_mode = #tpu.pipeline_mode<synchronous>, transform_indices = @transform_9, window_bounds = array<i64: 2, 16>}, {pipeline_mode = #tpu.pipeline_mode<synchronous>, transform_indices = @transform_10, window_bounds = array<i64: 2, 1>}, {transform_indices = @transform_11, window_bounds = array<i64: 2, 128>}]} {
    %c0 = arith.constant 0 : index
    %c0_0 = arith.constant 0 : index
    %0 = vector.load %arg1[%c0, %c0_0] : memref<64x128xf32, #tpu.memory_space<vmem>>, vector<64x128xf32>
    %c0_1 = arith.constant 0 : index
    %c0_2 = arith.constant 0 : index
    %1 = vector.load %arg2[%c0_1, %c0_2] : memref<256x64xf32, #tpu.memory_space<vmem>>, vector<256x64xf32>
    %cst = arith.constant dense<0.000000e+00> : vector<256x128xf32>
    %2 = tpu.matmul %1, %0, %cst {dimension_numbers = #tpu.dot_dimension_numbers<[1], [0], [0], [1], [0, 0, 1, 1], [], []>} : vector<256x64xf32>, vector<64x128xf32>, vector<256x128xf32> -> vector<256x128xf32>
    %c0_3 = arith.constant 0 : index
    %c0_4 = arith.constant 0 : index
    %3 = vector.load %arg3[%c0_3, %c0_4] : memref<256x1xf32, #tpu.memory_space<vmem>>, vector<256x1xf32>
    %4 = vector.broadcast %3 : vector<256x1xf32> to vector<256x128xf32>
    %5 = arith.addf %2, %4 : vector<256x128xf32>
    %cst_5 = arith.constant 2.000000e-01 : f32
    %6 = vector.broadcast %cst_5 : f32 to vector<256x128xf32>
    %7 = arith.mulf %6, %5 : vector<256x128xf32>
    %8 = arith.maximumf %5, %7 : vector<256x128xf32>
    %9 = vector.extract_strided_slice %8 {offsets = [0, 0], sizes = [128, 128], strides = [1, 1]} : vector<256x128xf32> to vector<128x128xf32>
    %10 = vector.extract_strided_slice %8 {offsets = [128, 0], sizes = [128, 128], strides = [1, 1]} : vector<256x128xf32> to vector<128x128xf32>
    %11 = arith.maximumf %9, %10 : vector<128x128xf32>
    %c0_6 = arith.constant 0 : index
    %c0_7 = arith.constant 0 : index
    %12 = vector.load %arg4[%c0_6, %c0_7] : memref<448x128xf32, #tpu.memory_space<vmem>>, vector<448x128xf32>
    %cst_8 = arith.constant dense<0.000000e+00> : vector<448x128xf32>
    %13 = tpu.matmul %12, %11, %cst_8 {dimension_numbers = #tpu.dot_dimension_numbers<[1], [0], [0], [1], [0, 0, 1, 1], [], []>} : vector<448x128xf32>, vector<128x128xf32>, vector<448x128xf32> -> vector<448x128xf32>
    %c0_9 = arith.constant 0 : index
    %c0_10 = arith.constant 0 : index
    %14 = vector.load %arg5[%c0_9, %c0_10] : memref<448x1xf32, #tpu.memory_space<vmem>>, vector<448x1xf32>
    %15 = vector.broadcast %14 : vector<448x1xf32> to vector<448x128xf32>
    %16 = arith.addf %13, %15 : vector<448x128xf32>
    %cst_11 = arith.constant 2.000000e-01 : f32
    %17 = vector.broadcast %cst_11 : f32 to vector<448x128xf32>
    %18 = arith.mulf %17, %16 : vector<448x128xf32>
    %19 = arith.maximumf %16, %18 : vector<448x128xf32>
    %20 = vector.extract_strided_slice %19 {offsets = [0, 0], sizes = [224, 128], strides = [1, 1]} : vector<448x128xf32> to vector<224x128xf32>
    %21 = vector.extract_strided_slice %19 {offsets = [224, 0], sizes = [224, 128], strides = [1, 1]} : vector<448x128xf32> to vector<224x128xf32>
    %22 = arith.maximumf %20, %21 : vector<224x128xf32>
    %c0_12 = arith.constant 0 : index
    %c0_13 = arith.constant 0 : index
    %23 = vector.load %arg6[%c0_12, %c0_13] : memref<384x224xf32, #tpu.memory_space<vmem>>, vector<384x224xf32>
    %cst_14 = arith.constant dense<0.000000e+00> : vector<384x128xf32>
    %24 = tpu.matmul %23, %22, %cst_14 {dimension_numbers = #tpu.dot_dimension_numbers<[1], [0], [0], [1], [0, 0, 1, 1], [], []>} : vector<384x224xf32>, vector<224x128xf32>, vector<384x128xf32> -> vector<384x128xf32>
    %c0_15 = arith.constant 0 : index
    %c0_16 = arith.constant 0 : index
    %25 = vector.load %arg7[%c0_15, %c0_16] : memref<384x1xf32, #tpu.memory_space<vmem>>, vector<384x1xf32>
    %26 = vector.broadcast %25 : vector<384x1xf32> to vector<384x128xf32>
    %27 = arith.addf %24, %26 : vector<384x128xf32>
    %cst_17 = arith.constant 2.000000e-01 : f32
    %28 = vector.broadcast %cst_17 : f32 to vector<384x128xf32>
    %29 = arith.mulf %28, %27 : vector<384x128xf32>
    %30 = arith.maximumf %27, %29 : vector<384x128xf32>
    %31 = vector.extract_strided_slice %30 {offsets = [0, 0], sizes = [192, 128], strides = [1, 1]} : vector<384x128xf32> to vector<192x128xf32>
    %32 = vector.extract_strided_slice %30 {offsets = [192, 0], sizes = [192, 128], strides = [1, 1]} : vector<384x128xf32> to vector<192x128xf32>
    %33 = arith.maximumf %31, %32 : vector<192x128xf32>
    %c0_18 = arith.constant 0 : index
    %c0_19 = arith.constant 0 : index
    %34 = vector.load %arg8[%c0_18, %c0_19] : memref<16x192xf32, #tpu.memory_space<vmem>>, vector<16x192xf32>
    %cst_20 = arith.constant dense<0.000000e+00> : vector<16x128xf32>
    %35 = tpu.matmul %34, %33, %cst_20 {dimension_numbers = #tpu.dot_dimension_numbers<[1], [0], [0], [1], [0, 0, 1, 1], [], []>} : vector<16x192xf32>, vector<192x128xf32>, vector<16x128xf32> -> vector<16x128xf32>
    %c0_21 = arith.constant 0 : index
    %c0_22 = arith.constant 0 : index
    %36 = vector.load %arg9[%c0_21, %c0_22] : memref<16x1xf32, #tpu.memory_space<vmem>>, vector<16x1xf32>
    %37 = vector.broadcast %36 : vector<16x1xf32> to vector<16x128xf32>
    %38 = arith.addf %35, %37 : vector<16x128xf32>
    %cst_23 = arith.constant 2.000000e-01 : f32
    %39 = vector.broadcast %cst_23 : f32 to vector<16x128xf32>
    %40 = arith.mulf %39, %38 : vector<16x128xf32>
    %41 = arith.maximumf %38, %40 : vector<16x128xf32>
    %c0_24 = arith.constant 0 : index
    %c0_25 = arith.constant 0 : index
    %42 = vector.load %arg10[%c0_24, %c0_25] : memref<2x16xf32, #tpu.memory_space<vmem>>, vector<2x16xf32>
    %cst_26 = arith.constant dense<0.000000e+00> : vector<2x128xf32>
    %43 = tpu.matmul %42, %41, %cst_26 {dimension_numbers = #tpu.dot_dimension_numbers<[1], [0], [0], [1], [0, 0, 1, 1], [], []>} : vector<2x16xf32>, vector<16x128xf32>, vector<2x128xf32> -> vector<2x128xf32>
    %c0_27 = arith.constant 0 : index
    %c0_28 = arith.constant 0 : index
    %44 = vector.load %arg11[%c0_27, %c0_28] : memref<2x1xf32, #tpu.memory_space<vmem>>, vector<2x1xf32>
    %45 = vector.broadcast %44 : vector<2x1xf32> to vector<2x128xf32>
    %46 = arith.addf %43, %45 : vector<2x128xf32>
    %c0_29 = arith.constant 0 : index
    %c0_30 = arith.constant 0 : index
    %47 = vector.load %arg12[%c0_29, %c0_30] : memref<2x128xf32, #tpu.memory_space<vmem>>, vector<2x128xf32>
    tpu.vector_store %arg12[%c0_29, %c0_30], %46 {strides = array<i32>} : memref<2x128xf32, #tpu.memory_space<vmem>>, vector<2x128xf32>,
    return
  }
  func.func @transform_0(%arg0: i32) -> (i32, i32) {
    %c0_i32 = arith.constant 0 : i32
    %c0_i32_0 = arith.constant 0 : i32
    return %c0_i32, %arg0 : i32, i32
  }
  func.func @transform_1(%arg0: i32) -> (i32, i32) {
    %c0_i32 = arith.constant 0 : i32
    %c0_i32_0 = arith.constant 0 : i32
    %c0_i32_1 = arith.constant 0 : i32
    return %c0_i32, %c0_i32_0 : i32, i32
  }
  func.func @transform_2(%arg0: i32) -> (i32, i32) {
    %c0_i32 = arith.constant 0 : i32
    %c0_i32_0 = arith.constant 0 : i32
    %c0_i32_1 = arith.constant 0 : i32
    return %c0_i32, %c0_i32_0 : i32, i32
  }
  func.func @transform_3(%arg0: i32) -> (i32, i32) {
    %c0_i32 = arith.constant 0 : i32
    %c0_i32_0 = arith.constant 0 : i32
    %c0_i32_1 = arith.constant 0 : i32
    return %c0_i32, %c0_i32_0 : i32, i32
  }
  func.func @transform_4(%arg0: i32) -> (i32, i32) {
    %c0_i32 = arith.constant 0 : i32
    %c0_i32_0 = arith.constant 0 : i32
    %c0_i32_1 = arith.constant 0 : i32
    return %c0_i32, %c0_i32_0 : i32, i32
  }
  func.func @transform_5(%arg0: i32) -> (i32, i32) {
    %c0_i32 = arith.constant 0 : i32
    %c0_i32_0 = arith.constant 0 : i32
    %c0_i32_1 = arith.constant 0 : i32
    return %c0_i32, %c0_i32_0 : i32, i32
  }
  func.func @transform_6(%arg0: i32) -> (i32, i32) {
    %c0_i32 = arith.constant 0 : i32
    %c0_i32_0 = arith.constant 0 : i32
    %c0_i32_1 = arith.constant 0 : i32
    return %c0_i32, %c0_i32_0 : i32, i32
  }
  func.func @transform_7(%arg0: i32) -> (i32, i32) {
    %c0_i32 = arith.constant 0 : i32
    %c0_i32_0 = arith.constant 0 : i32
    %c0_i32_1 = arith.constant 0 : i32
    return %c0_i32, %c0_i32_0 : i32, i32
  }
  func.func @transform_8(%arg0: i32) -> (i32, i32) {
    %c0_i32 = arith.constant 0 : i32
    %c0_i32_0 = arith.constant 0 : i32
    %c0_i32_1 = arith.constant 0 : i32
    return %c0_i32, %c0_i32_0 : i32, i32
  }
  func.func @transform_9(%arg0: i32) -> (i32, i32) {
    %c0_i32 = arith.constant 0 : i32
    %c0_i32_0 = arith.constant 0 : i32
    %c0_i32_1 = arith.constant 0 : i32
    return %c0_i32, %c0_i32_0 : i32, i32
  }
  func.func @transform_10(%arg0: i32) -> (i32, i32) {
    %c0_i32 = arith.constant 0 : i32
    %c0_i32_0 = arith.constant 0 : i32
    %c0_i32_1 = arith.constant 0 : i32
    return %c0_i32, %c0_i32_0 : i32, i32
  }
  func.func @transform_11(%arg0: i32) -> (i32, i32) {
    %c0_i32 = arith.constant 0 : i32
    %c0_i32_0 = arith.constant 0 : i32
    return %c0_i32, %arg0 : i32, i32
  }
}

</mosaic_0001>

<bundles_post_ra>
// kernel: convnet_forward.1
= control target key start
LH: loop header
LB: loop body
LE: loop exit
PB: predicated region body
PF: predicated region fallthrough
CT: control target
= control target key end

     0   :  { %v3136_v0 = vmov 0   ;;  %vm270_vm0 = vcmask 523264   ;;  %vm1933_vm1 = vcmask 785408   ;;  %vm3138_vm2 = vmmov 0   ;;  %s5200_s2 = inlined_call_operand.vmem [shape: f32[256,1], index: 2, kind: input, shape index: {}]   ;;  %s5201_s0 = inlined_call_operand.vmem [shape: f32[64,128], index: 0, kind: input, shape index: {}]   ;;  %s5202_s1 = inlined_call_operand.vmem [shape: f32[256,64], index: 1, kind: input, shape index: {}]   ;;  %s5203_s4 = inlined_call_operand.vmem [shape: f32[448,1], index: 4, kind: input, shape index: {}]   ;;  %s5204_s6 = inlined_call_operand.vmem [shape: f32[384,1], index: 6, kind: input, shape index: {}]   ;;  %s5205_s3 = inlined_call_operand.vmem [shape: f32[448,128], index: 3, kind: input, shape index: {}]   ;;  %s5206_s8 = inlined_call_operand.vmem [shape: f32[16,1], index: 8, kind: input, shape index: {}]   ;;  %s5207_s10 = inlined_call_operand.vmem [shape: f32[2,1], index: 10, kind: input, shape index: {}]   ;;  %s5208_s5 = inlined_call_operand.vmem [shape: f32[384,224], index: 5, kind: input, shape index: {}]   ;;  %s5209_s7 = inlined_call_operand.vmem [shape: f32[16,192], index: 7, kind: input, shape index: {}]   ;;  %s5210_s9 = inlined_call_operand.vmem [shape: f32[2,16], index: 9, kind: input, shape index: {}]   ;;  %s5211_s11 = inlined_call_operand.vmem [shape: f32[2,128], index: 11, kind: output, shape index: {}]  }
   0x1   :  { %3135 = vset.pattern.permute.xlu1 %v3136_v0  ;;  %3134 = vset.pattern.permute.xlu0 %v3136_v0  ;;  %v93_v1 = vld [vmem:[%s5200_s2 + $0x78] sm:$0xff]  ;;  %v92_v2 = vld [vmem:[%s5200_s2 + $0x70] sm:$0xff]  ;;  %v43_v7 = vld [vmem:[%s5201_s0 + $0x28] sm:$0xff]  ;;  %vm2611_vm3 = vcmask 130048  }
   0x2   :  { %v45_v3 = vld [vmem:[%s5201_s0 + $0x38] sm:$0xff]  ;;  %187 = vperm.xlu0 %3134, %v93_v1   ;;  %182 = vperm.xlu1 %3135, %v92_v2   ;;  %v44_v4 = vld [vmem:[%s5201_s0 + $0x30] sm:$0xff]  ;;  %v42_v8 = vld [vmem:[%s5201_s0 + $0x20] sm:$0xff] }
   0x3   :  { %2888 = vmatprep.subr.mxu0 %v45_v3  ;;  %v109_v5 = vld [vmem:[%s5200_s2 + $0xf8] sm:$0xff]  ;;  %v108_v6 = vld [vmem:[%s5200_s2 + $0xf0] sm:$0xff]  ;;  %v46_v9 = vld [vmem:[%s5202_s1] sm:$0xff] }
   0x4   :  { %2889 = vmatpush3.msra.mxu0 %v45_v3  ;;  %v91_v10 = vld [vmem:[%s5200_s2 + $0x68] sm:$0xff]  ;;  %v41_v12 = vld [vmem:[%s5201_s0 + $0x18] sm:$0xff]  ;;  %2904 = vmatprep.mubr.msk.f32.mxu0 %vm270_vm0, %v46_v9  ;;  %v40_v13 = vld [vmem:[%s5201_s0 + $0x10] sm:$0xff] }
   0x5   :  { %2890 = vmatprep.subr.mxu0 %v44_v4  ;;  %v107_v11 = vld [vmem:[%s5200_s2 + $0xe8] sm:$0xff]  ;;  %v90_v14 = vld [vmem:[%s5200_s2 + $0x60] sm:$0xff]  ;;  %v89_v18 = vld [vmem:[%s5200_s2 + $0x58] sm:$0xff] }
   0x6   :  { %2891 = vmatpush3.msra.mxu0 %v44_v4  ;;  %267 = vperm.xlu0 %3134, %v109_v5   ;;  %v106_v15 = vld [vmem:[%s5200_s2 + $0xe0] sm:$0xff]  ;;  %v39_v16 = vld [vmem:[%s5201_s0 + $0x8] sm:$0xff]  ;;  %v105_v19 = vld [vmem:[%s5200_s2 + $0xd8] sm:$0xff] }
   0x7   :  { %262 = vperm.xlu1 %3135, %v108_v6   ;;  %2892 = vmatprep.subr.mxu0 %v43_v7  ;;  %v38_v17 = vld [vmem:[%s5201_s0] sm:$0xff]  ;;  %v47_v20 = vld [vmem:[%s5202_s1 + $0x8] sm:$0xff]  ;;  %v48_v21 = vld [vmem:[%s5202_s1 + $0x10] sm:$0xff] }
   0x8   :  { %2893 = vmatpush3.msra.mxu0 %v43_v7  ;;  %v88_v22 = vld [vmem:[%s5200_s2 + $0x50] sm:$0xff]  ;;  %v49_v24 = vld [vmem:[%s5202_s1 + $0x18] sm:$0xff]  ;;  %v50_v25 = vld [vmem:[%s5202_s1 + $0x20] sm:$0xff] }
   0x9   :  { %2894 = vmatprep.subr.mxu0 %v42_v8  ;;  %v104_v23 = vld [vmem:[%s5200_s2 + $0xd0] sm:$0xff]  ;;  %v87_v26 = vld [vmem:[%s5200_s2 + $0x48] sm:$0xff]  ;;  %v86_v30 = vld [vmem:[%s5200_s2 + $0x40] sm:$0xff] }
   0xa   :  { %2895 = vmatpush3.msra.mxu0 %v42_v8  ;;  %177 = vperm.xlu0 %3134, %v91_v10   ;;  %v103_v27 = vld [vmem:[%s5200_s2 + $0xc8] sm:$0xff]  ;;  %v52_v29 = vld [vmem:[%s5202_s1 + $0x30] sm:$0xff]  ;;  %v102_v31 = vld [vmem:[%s5200_s2 + $0xc0] sm:$0xff] }
   0xb   :  { %257 = vperm.xlu1 %3135, %v107_v11   ;;  %2896 = vmatprep.subr.mxu0 %v41_v12  ;;  %v51_v28 = vld [vmem:[%s5202_s1 + $0x28] sm:$0xff]  ;;  %v53_v32 = vld [vmem:[%s5202_s1 + $0x38] sm:$0xff]  ;;  %v54_v33 = vld [vmem:[%s5202_s1 + $0x40] sm:$0xff] }
   0xc   :  { %2897 = vmatpush3.msra.mxu0 %v41_v12  ;;  %v85_v34 = vld [vmem:[%s5200_s2 + $0x38] sm:$0xff]  ;;  %v55_v36 = vld [vmem:[%s5202_s1 + $0x48] sm:$0xff]  ;;  %v56_v37 = vld [vmem:[%s5202_s1 + $0x50] sm:$0xff] }
   0xd   :  { %2898 = vmatprep.subr.mxu0 %v40_v13  ;;  %v101_v35 = vld [vmem:[%s5200_s2 + $0xb8] sm:$0xff]  ;;  %v84_v38 = vld [vmem:[%s5200_s2 + $0x30] sm:$0xff]  ;;  %v58_v41 = vld [vmem:[%s5202_s1 + $0x60] sm:$0xff] }
   0xe   :  { %2899 = vmatpush3.msra.mxu0 %v40_v13  ;;  %172 = vperm.xlu0 %3134, %v90_v14   ;;  %v100_v39 = vld [vmem:[%s5200_s2 + $0xb0] sm:$0xff]  ;;  %v57_v40 = vld [vmem:[%s5202_s1 + $0x58] sm:$0xff]  ;;  %v83_v42 = vld [vmem:[%s5200_s2 + $0x28] sm:$0xff] }
   0xf   :  { %252 = vperm.xlu1 %3135, %v106_v15   ;;  %2900 = vmatprep.subr.mxu0 %v39_v16  ;;  %v99_v43 = vld [vmem:[%s5200_s2 + $0xa8] sm:$0xff]  ;;  %v60_v45 = vld [vmem:[%s5202_s1 + $0x70] sm:$0xff]  ;;  %v82_v46 = vld [vmem:[%s5200_s2 + $0x20] sm:$0xff] }
  0x10   :  { %2901 = vmatpush3.msra.mxu0 %v39_v16  ;;  %v59_v44 = vld [vmem:[%s5202_s1 + $0x68] sm:$0xff]  ;;  %v98_v47 = vld [vmem:[%s5200_s2 + $0xa0] sm:$0xff]  ;;  %v61_v48 = vld [vmem:[%s5202_s1 + $0x78] sm:$0xff] }
  0x11   :  { %2902 = vmatprep.subr.mxu0 %v38_v17  ;;  %v62_v49 = vld [vmem:[%s5202_s1 + $0x80] sm:$0xff]  ;;  %v81_v50 = vld [vmem:[%s5200_s2 + $0x18] sm:$0xff]  ;;  %v63_v52 = vld [vmem:[%s5202_s1 + $0x88] sm:$0xff] }
  0x12   :  { %2903 = vmatpush3.msra.mxu0 %v38_v17  ;;  %167 = vperm.xlu0 %3134, %v89_v18   ;;  %v97_v51 = vld [vmem:[%s5200_s2 + $0x98] sm:$0xff]  ;;  %v64_v53 = vld [vmem:[%s5202_s1 + $0x90] sm:$0xff]  ;;  %v66_v57 = vld [vmem:[%s5202_s1 + $0xa0] sm:$0xff] }
  0x13   :  { %247 = vperm.xlu1 %3135, %v105_v19   ;;  %2905 = vmatmul.mubr.msk.f32.vlgmr.msra.gmra.mxu0 %vm270_vm0, %v47_v20  ;;  %v80_v54 = vld [vmem:[%s5200_s2 + $0x10] sm:$0xff]  ;;  %v65_v56 = vld [vmem:[%s5202_s1 + $0x98] sm:$0xff]  ;;  %v79_v58 = vld [vmem:[%s5200_s2 + $0x8] sm:$0xff] }
  0x14   :  { %2907 = vmatprep.mubr.msk.f32.mxu0 %vm270_vm0, %v48_v21  ;;  %v96_v55 = vld [vmem:[%s5200_s2 + $0x90] sm:$0xff]  ;;  %v95_v59 = vld [vmem:[%s5200_s2 + $0x88] sm:$0xff]  ;;  %v78_v62 = vld [vmem:[%s5200_s2] sm:$0xff] }
  0x15   :  { %v67_v60 = vld [vmem:[%s5202_s1 + $0xa8] sm:$0xff]  ;;  %v68_v61 = vld [vmem:[%s5202_s1 + $0xb0] sm:$0xff]  ;;  %v94_v63 = vld [vmem:[%s5200_s2 + $0x80] sm:$0xff] }
  0x16   :  { %162 = vperm.xlu0 %3134, %v88_v22   ;;  %v69_v0 = vld [vmem:[%s5202_s1 + $0xb8] sm:$0xff]  ;;  %v70_v1 = vld [vmem:[%s5202_s1 + $0xc0] sm:$0xff]  ;;  %v71_v4 = vld [vmem:[%s5202_s1 + $0xc8] sm:$0xff] }
  0x17   :  { %242 = vperm.xlu1 %3135, %v104_v23   ;;  %2908 = vmatmul.mubr.msk.f32.gmra.mxu0 %vm270_vm0, %v49_v24  ;;  %v743_v2 = vld [vmem:[%s5203_s4 + $0x78] sm:$0xff]  ;;  %v72_v5 = vld [vmem:[%s5202_s1 + $0xd0] sm:$0xff]  ;;  %v74_v9 = vld [vmem:[%s5202_s1 + $0xe0] sm:$0xff] }
  0x18   :  { %2910 = vmatprep.mubr.msk.f32.mxu0 %vm270_vm0, %v50_v25  ;;  %v771_v3 = vld [vmem:[%s5203_s4 + $0x158] sm:$0xff]  ;;  %v742_v6 = vld [vmem:[%s5203_s4 + $0x70] sm:$0xff]  ;;  %v741_v10 = vld [vmem:[%s5203_s4 + $0x68] sm:$0xff] }
  0x19   :  { %v770_v7 = vld [vmem:[%s5203_s4 + $0x150] sm:$0xff]  ;;  %v73_v8 = vld [vmem:[%s5202_s1 + $0xd8] sm:$0xff]  ;;  %v769_v11 = vld [vmem:[%s5203_s4 + $0x148] sm:$0xff] }
  0x1a   :  { %157 = vperm.xlu0 %3134, %v87_v26   ;;  %v75_v12 = vld [vmem:[%s5202_s1 + $0xe8] sm:$0xff]  ;;  %v76_v13 = vld [vmem:[%s5202_s1 + $0xf0] sm:$0xff]  ;;  %v740_v14 = vld [vmem:[%s5203_s4 + $0x60] sm:$0xff] }
  0x1b   :  { %237 = vperm.xlu1 %3135, %v103_v27   ;;  %2911 = vmatmul.mubr.msk.f32.gmra.mxu0 %vm270_vm0, %v51_v28  ;;  %v768_v15 = vld [vmem:[%s5203_s4 + $0x140] sm:$0xff]  ;;  %v77_v16 = vld [vmem:[%s5202_s1 + $0xf8] sm:$0xff]  ;;  %v738_v19 = vld [vmem:[%s5203_s4 + $0x50] sm:$0xff] }
  0x1c   :  { %2913 = vmatprep.mubr.msk.f32.mxu0 %vm270_vm0, %v52_v29  ;;  %v739_v17 = vld [vmem:[%s5203_s4 + $0x58] sm:$0xff]  ;;  %v766_v20 = vld [vmem:[%s5203_s4 + $0x130] sm:$0xff]  ;;  %v737_v21 = vld [vmem:[%s5203_s4 + $0x48] sm:$0xff] }
  0x1d   :  { %v767_v18 = vld [vmem:[%s5203_s4 + $0x138] sm:$0xff]  ;;  %v765_v22 = vld [vmem:[%s5203_s4 + $0x128] sm:$0xff]  ;;  %v736_v23 = vld [vmem:[%s5203_s4 + $0x40] sm:$0xff] }
  0x1e   :  { %152 = vperm.xlu0 %3134, %v86_v30   ;;  %v764_v24 = vld [vmem:[%s5203_s4 + $0x120] sm:$0xff]  ;;  %v735_v25 = vld [vmem:[%s5203_s4 + $0x38] sm:$0xff]  ;;  %v734_v27 = vld [vmem:[%s5203_s4 + $0x30] sm:$0xff] }
  0x1f   :  { %232 = vperm.xlu1 %3135, %v102_v31   ;;  %2914 = vmatmul.mubr.msk.f32.gmra.mxu0 %vm270_vm0, %v53_v32  ;;  %v763_v26 = vld [vmem:[%s5203_s4 + $0x118] sm:$0xff]  ;;  %v762_v28 = vld [vmem:[%s5203_s4 + $0x110] sm:$0xff]  ;;  %v733_v29 = vld [vmem:[%s5203_s4 + $0x28] sm:$0xff] }
  0x20   :  { %2916 = vmatprep.mubr.msk.f32.mxu0 %vm270_vm0, %v54_v33  ;;  %v761_v30 = vld [vmem:[%s5203_s4 + $0x108] sm:$0xff]  ;;  %v732_v31 = vld [vmem:[%s5203_s4 + $0x20] sm:$0xff]  ;;  %v731_v33 = vld [vmem:[%s5203_s4 + $0x18] sm:$0xff] }
  0x21   :  { %v760_v32 = vld [vmem:[%s5203_s4 + $0x100] sm:$0xff] }
  0x22   :  { %147 = vperm.xlu0 %3134, %v85_v34   ;;  %v759_v34 = vld [vmem:[%s5203_s4 + $0xf8] sm:$0xff] }
  0x23   :  { %227 = vperm.xlu1 %3135, %v101_v35   ;;  %2917 = vmatmul.mubr.msk.f32.gmra.mxu0 %vm270_vm0, %v55_v36  ;;  %v730_v35 = vld [vmem:[%s5203_s4 + $0x10] sm:$0xff] }
  0x24   :  { %2919 = vmatprep.mubr.msk.f32.mxu0 %vm270_vm0, %v56_v37  ;;  %v758_v36 = vld [vmem:[%s5203_s4 + $0xf0] sm:$0xff]  ;;  %v729_v37 = vld [vmem:[%s5203_s4 + $0x8] sm:$0xff] }
  0x26   :  { %142 = vperm.xlu0 %3134, %v84_v38   ;;  %v757_v38 = vld [vmem:[%s5203_s4 + $0xe8] sm:$0xff] }
  0x27   :  { %222 = vperm.xlu1 %3135, %v100_v39   ;;  %2920 = vmatmul.mubr.msk.f32.gmra.mxu0 %vm270_vm0, %v57_v40  ;;  %v728_v39 = vld [vmem:[%s5203_s4] sm:$0xff] }
  0x28   :  { %2922 = vmatprep.mubr.msk.f32.mxu0 %vm270_vm0, %v58_v41  ;;  %v756_v40 = vld [vmem:[%s5203_s4 + $0xe0] sm:$0xff]  ;;  %v755_v41 = vld [vmem:[%s5203_s4 + $0xd8] sm:$0xff] }
  0x2a   :  { %137 = vperm.xlu0 %3134, %v83_v42   ;;  %v783_v42 = vld [vmem:[%s5203_s4 + $0x1b8] sm:$0xff] }
  0x2b   :  { %217 = vperm.xlu1 %3135, %v99_v43   ;;  %2923 = vmatmul.mubr.msk.f32.gmra.mxu0 %vm270_vm0, %v59_v44  ;;  %v754_v43 = vld [vmem:[%s5203_s4 + $0xd0] sm:$0xff] }
  0x2c   :  { %2925 = vmatprep.mubr.msk.f32.mxu0 %vm270_vm0, %v60_v45  ;;  %v782_v44 = vld [vmem:[%s5203_s4 + $0x1b0] sm:$0xff]  ;;  %v753_v45 = vld [vmem:[%s5203_s4 + $0xc8] sm:$0xff] }
  0x2e   :  { %132 = vperm.xlu0 %3134, %v82_v46   ;;  %v781_v46 = vld [vmem:[%s5203_s4 + $0x1a8] sm:$0xff] }
  0x2f   :  { %212 = vperm.xlu1 %3135, %v98_v47   ;;  %2926 = vmatmul.mubr.msk.f32.gmra.mxu0 %vm270_vm0, %v61_v48  ;;  %v752_v47 = vld [vmem:[%s5203_s4 + $0xc0] sm:$0xff] }
  0x30   :  { %2928 = vmatprep.mubr.msk.f32.mxu0 %vm270_vm0, %v62_v49  ;;  %v780_v48 = vld [vmem:[%s5203_s4 + $0x1a0] sm:$0xff]  ;;  %v751_v49 = vld [vmem:[%s5203_s4 + $0xb8] sm:$0xff] }
  0x32   :  { %127 = vperm.xlu0 %3134, %v81_v50   ;;  %v779_v50 = vld [vmem:[%s5203_s4 + $0x198] sm:$0xff] }
  0x33   :  { %207 = vperm.xlu1 %3135, %v97_v51   ;;  %2929 = vmatmul.mubr.msk.f32.gmra.mxu0 %vm270_vm0, %v63_v52  ;;  %v750_v51 = vld [vmem:[%s5203_s4 + $0xb0] sm:$0xff] }
  0x34   :  { %2931 = vmatprep.mubr.msk.f32.mxu0 %vm270_vm0, %v64_v53  ;;  %v778_v52 = vld [vmem:[%s5203_s4 + $0x190] sm:$0xff]  ;;  %v749_v53 = vld [vmem:[%s5203_s4 + $0xa8] sm:$0xff] }
  0x36   :  { %122 = vperm.xlu0 %3134, %v80_v54   ;;  %v777_v54 = vld [vmem:[%s5203_s4 + $0x188] sm:$0xff] }
  0x37   :  { %202 = vperm.xlu1 %3135, %v96_v55   ;;  %2932 = vmatmul.mubr.msk.f32.gmra.mxu0 %vm270_vm0, %v65_v56  ;;  %v748_v55 = vld [vmem:[%s5203_s4 + $0xa0] sm:$0xff] }
  0x38   :  { %2934 = vmatprep.mubr.msk.f32.mxu0 %vm270_vm0, %v66_v57  ;;  %v776_v56 = vld [vmem:[%s5203_s4 + $0x180] sm:$0xff] }
  0x3a   :  { %117 = vperm.xlu0 %3134, %v79_v58   ;;  %v747_v58 = vld [vmem:[%s5203_s4 + $0x98] sm:$0xff] }
  0x3b   :  { %197 = vperm.xlu1 %3135, %v95_v59   ;;  %2935 = vmatmul.mubr.msk.f32.gmra.mxu0 %vm270_vm0, %v67_v60  ;;  %v775_v59 = vld [vmem:[%s5203_s4 + $0x178] sm:$0xff] }
  0x3c   :  { %2937 = vmatprep.mubr.msk.f32.mxu0 %vm270_vm0, %v68_v61  ;;  %v746_v61 = vld [vmem:[%s5203_s4 + $0x90] sm:$0xff] }
  0x3e   :  { %112 = vperm.xlu0 %3134, %v78_v62  }
  0x3f   :  { %192 = vperm.xlu1 %3135, %v94_v63   ;;  %2938 = vmatmul.mubr.msk.f32.gmra.mxu0 %vm270_vm0, %v69_v0  ;;  %v774_v63 = vld [vmem:[%s5203_s4 + $0x170] sm:$0xff] }
  0x40   :  { %2940 = vmatprep.mubr.msk.f32.mxu0 %vm270_vm0, %v70_v1  ;;  %v745_v1 = vld [vmem:[%s5203_s4 + $0x88] sm:$0xff] }
  0x42   :  { %861 = vperm.xlu0 %3134, %v743_v2   ;;  %v773_v2 = vld [vmem:[%s5203_s4 + $0x168] sm:$0xff] }
  0x43   :  { %1001 = vperm.xlu1 %3135, %v771_v3   ;;  %2941 = vmatmul.mubr.msk.f32.gmra.mxu0 %vm270_vm0, %v71_v4  ;;  %v744_v4 = vld [vmem:[%s5203_s4 + $0x80] sm:$0xff] }
  0x44   :  { %2943 = vmatprep.mubr.msk.f32.mxu0 %vm270_vm0, %v72_v5  ;;  %v772_v5 = vld [vmem:[%s5203_s4 + $0x160] sm:$0xff] }
  0x46   :  { %856 = vperm.xlu0 %3134, %v742_v6  }
  0x47   :  { %996 = vperm.xlu1 %3135, %v770_v7   ;;  %2944 = vmatmul.mubr.msk.f32.gmra.mxu0 %vm270_vm0, %v73_v8  ;;  %v1660_v7 = vld [vmem:[%s5204_s6 + $0x78] sm:$0xff] }
  0x48   :  { %2946 = vmatprep.mubr.msk.f32.mxu0 %vm270_vm0, %v74_v9  ;;  %v1684_v9 = vld [vmem:[%s5204_s6 + $0x138] sm:$0xff] }
  0x4a   :  { %851 = vperm.xlu0 %3134, %v741_v10  }
  0x4b   :  { %991 = vperm.xlu1 %3135, %v769_v11   ;;  %2947 = vmatmul.mubr.msk.f32.gmra.mxu0 %vm270_vm0, %v75_v12  ;;  %v1659_v11 = vld [vmem:[%s5204_s6 + $0x70] sm:$0xff] }
  0x4c   :  { %2949 = vmatprep.mubr.msk.f32.mxu0 %vm270_vm0, %v76_v13  ;;  %v1683_v12 = vld [vmem:[%s5204_s6 + $0x130] sm:$0xff] }
  0x4e   :  { %846 = vperm.xlu0 %3134, %v740_v14   ;;  %v672_v14 = vld [vmem:[%s5205_s3] sm:$0xff] }
  0x4f   :  { %986 = vperm.xlu1 %3135, %v768_v15   ;;  %2950 = vmatmul.mubr.msk.f32.gmra.mxu0 %vm270_vm0, %v77_v16  ;;  %v1658_v15 = vld [vmem:[%s5204_s6 + $0x68] sm:$0xff] }
  0x50   :  { %2984 = vmatprep.mubr.f32.mxu1 %v672_v14  ;;  %v1682_v16 = vld [vmem:[%s5204_s6 + $0x128] sm:$0xff] }
  0x52   :  { %841 = vperm.xlu0 %3134, %v739_v17  }
  0x53   :  { %981 = vperm.xlu1 %3135, %v767_v18   ;;  %v1657_v18 = vld [vmem:[%s5204_s6 + $0x60] sm:$0xff] }
  0x56   :  { %836 = vperm.xlu0 %3134, %v738_v19  }
  0x57   :  { %976 = vperm.xlu1 %3135, %v766_v20   ;;  %v1681_v20 = vld [vmem:[%s5204_s6 + $0x120] sm:$0xff] }
  0x5a   :  { %831 = vperm.xlu0 %3134, %v737_v21  }
  0x5b   :  { %971 = vperm.xlu1 %3135, %v765_v22   ;;  %v1656_v22 = vld [vmem:[%s5204_s6 + $0x58] sm:$0xff] }
  0x5e   :  { %826 = vperm.xlu0 %3134, %v736_v23   ;;  %v1680_v23 = vld [vmem:[%s5204_s6 + $0x118] sm:$0xff] }
  0x5f   :  { %966 = vperm.xlu1 %3135, %v764_v24  }
  0x62   :  { %821 = vperm.xlu0 %3134, %v735_v25   ;;  %v1655_v25 = vld [vmem:[%s5204_s6 + $0x50] sm:$0xff] }
  0x63   :  { %961 = vperm.xlu1 %3135, %v763_v26   ;;  %v1679_v26 = vld [vmem:[%s5204_s6 + $0x110] sm:$0xff] }
  0x66   :  { %816 = vperm.xlu0 %3134, %v734_v27  }
  0x67   :  { %956 = vperm.xlu1 %3135, %v762_v28   ;;  %v1654_v28 = vld [vmem:[%s5204_s6 + $0x48] sm:$0xff] }
  0x6a   :  { %811 = vperm.xlu0 %3134, %v733_v29  }
  0x6b   :  { %951 = vperm.xlu1 %3135, %v761_v30   ;;  %v1678_v30 = vld [vmem:[%s5204_s6 + $0x108] sm:$0xff] }
  0x6e   :  { %806 = vperm.xlu0 %3134, %v732_v31  }
  0x6f   :  { %946 = vperm.xlu1 %3135, %v760_v32   ;;  %v1653_v32 = vld [vmem:[%s5204_s6 + $0x40] sm:$0xff] }
  0x72   :  { %801 = vperm.xlu0 %3134, %v731_v33   ;;  %v1677_v33 = vld [vmem:[%s5204_s6 + $0x100] sm:$0xff] }
  0x73   :  { %941 = vperm.xlu1 %3135, %v759_v34  }
  0x76   :  { %796 = vperm.xlu0 %3134, %v730_v35   ;;  %v1652_v35 = vld [vmem:[%s5204_s6 + $0x38] sm:$0xff] }
  0x77   :  { %936 = vperm.xlu1 %3135, %v758_v36   ;;  %v1676_v36 = vld [vmem:[%s5204_s6 + $0xf8] sm:$0xff] }
  0x7a   :  { %791 = vperm.xlu0 %3134, %v729_v37  }
  0x7b   :  { %931 = vperm.xlu1 %3135, %v757_v38  }
  0x7d   :  { %v3591_v57 = vpop.permute.xlu0 %187  ;;  %v3599_v60 = vpop.permute.xlu1 %182 }
  0x7e   :  { %786 = vperm.xlu0 %3134, %v728_v39   ;;  %v1651_v39 = vld [vmem:[%s5204_s6 + $0x30] sm:$0xff] }
  0x7f   :  { %926 = vperm.xlu1 %3135, %v756_v40  }
  0x81   :  { %v3604_v62 = vpop.permute.xlu0 %267 }
  0x82   :  { %921 = vperm.xlu0 %3134, %v755_v41   ;;  %v3609_v0 = vpop.permute.xlu1 %262  ;;  %v1675_v41 = vld [vmem:[%s5204_s6 + $0xf0] sm:$0xff] }
  0x83   :  { %1061 = vperm.xlu1 %3135, %v783_v42  }
  0x85   :  { %v3617_v3 = vpop.permute.xlu0 %177 }
  0x86   :  { %916 = vperm.xlu0 %3134, %v754_v43   ;;  %v3625_v6 = vpop.permute.xlu1 %257 }
  0x87   :  { %1056 = vperm.xlu1 %3135, %v782_v44  }
  0x89   :  { %v3630_v8 = vpop.permute.xlu0 %172 }
  0x8a   :  { %911 = vperm.xlu0 %3134, %v753_v45   ;;  %v3635_v10 = vpop.permute.xlu1 %252  ;;  %v1650_v45 = vld [vmem:[%s5204_s6 + $0x28] sm:$0xff] }
  0x8b   :  { %1051 = vperm.xlu1 %3135, %v781_v46   ;;  %v1674_v46 = vld [vmem:[%s5204_s6 + $0xe8] sm:$0xff] }
  0x8d   :  { %v3643_v13 = vpop.permute.xlu0 %167 }
  0x8e   :  { %906 = vperm.xlu0 %3134, %v752_v47   ;;  %v3654_v17 = vpop.permute.xlu1 %247 }
  0x8f   :  { %1046 = vperm.xlu1 %3135, %v780_v48  }
  0x91   :  { %v3659_v19 = vpop.permute.xlu0 %162 }
  0x92   :  { %901 = vperm.xlu0 %3134, %v751_v49   ;;  %v3664_v21 = vpop.permute.xlu1 %242 }
  0x93   :  { %1041 = vperm.xlu1 %3135, %v779_v50   ;;  %v1649_v50 = vld [vmem:[%s5204_s6 + $0x20] sm:$0xff] }
  0x95   :  { %v3672_v24 = vpop.permute.xlu0 %157 }
  0x96   :  { %896 = vperm.xlu0 %3134, %v750_v51   ;;  %v3680_v27 = vpop.permute.xlu1 %237  ;;  %v1673_v51 = vld [vmem:[%s5204_s6 + $0xe0] sm:$0xff] }
  0x97   :  { %1036 = vperm.xlu1 %3135, %v778_v52  }
  0x99   :  { %v3685_v29 = vpop.permute.xlu0 %152 }
  0x9a   :  { %891 = vperm.xlu0 %3134, %v749_v53   ;;  %v3690_v31 = vpop.permute.xlu1 %232 }
  0x9b   :  { %1031 = vperm.xlu1 %3135, %v777_v54  }
  0x9d   :  { %v3698_v34 = vpop.permute.xlu0 %147 }
  0x9e   :  { %886 = vperm.xlu0 %3134, %v748_v55   ;;  %v3706_v37 = vpop.permute.xlu1 %227  ;;  %v1648_v55 = vld [vmem:[%s5204_s6 + $0x18] sm:$0xff] }
  0x9f   :  { %1026 = vperm.xlu1 %3135, %v776_v56  }
  0xa1   :  { %v3713_v40 = vpop.permute.xlu0 %142 }
  0xa2   :  { %881 = vperm.xlu0 %3134, %v747_v58   ;;  %v3720_v43 = vpop.permute.xlu1 %222  ;;  %v1672_v58 = vld [vmem:[%s5204_s6 + $0xd8] sm:$0xff] }
  0xa3   :  { %1021 = vperm.xlu1 %3135, %v775_v59  }
  0xa5   :  { %v3732_v48 = vpop.permute.xlu0 %137 }
  0xa6   :  { %876 = vperm.xlu0 %3134, %v746_v61   ;;  %v3742_v52 = vpop.permute.xlu1 %217 }
  0xa7   :  { %1016 = vperm.xlu1 %3135, %v774_v63  }
  0xa9   :  { %v3751_v56 = vpop.permute.xlu0 %132 }
  0xaa   :  { %871 = vperm.xlu0 %3134, %v745_v1   ;;  %v3758_v61 = vpop.permute.xlu1 %212  ;;  %v1647_v1 = vld [vmem:[%s5204_s6 + $0x10] sm:$0xff] }
  0xab   :  { %1011 = vperm.xlu1 %3135, %v773_v2   ;;  %v1671_v2 = vld [vmem:[%s5204_s6 + $0xd0] sm:$0xff] }
  0xae   :  { %866 = vperm.xlu0 %3134, %v744_v4  }
  0xaf   :  { %1006 = vperm.xlu1 %3135, %v772_v5   ;;  %v3770_v5 = vpop.permute.xlu0 %127 }
  0xb2   :  { %1770 = vperm.xlu0 %3134, %v1660_v7  }
  0xb3   :  { %1890 = vperm.xlu1 %3135, %v1684_v9   ;;  %v1646_v9 = vld [vmem:[%s5204_s6 + $0x8] sm:$0xff] }
  0xb6   :  { %1765 = vperm.xlu0 %3134, %v1659_v11   ;;  %v1670_v11 = vld [vmem:[%s5204_s6 + $0xc8] sm:$0xff] }
  0xb7   :  { %1885 = vperm.xlu1 %3135, %v1683_v12   ;;  %v3780_v12 = vpop.permute.xlu1 %207 }
  0xba   :  { %1760 = vperm.xlu0 %3134, %v1658_v15  }
  0xbb   :  { %1880 = vperm.xlu1 %3135, %v1682_v16   ;;  %v1645_v16 = vld [vmem:[%s5204_s6] sm:$0xff] }
  0xbe   :  { %1755 = vperm.xlu0 %3134, %v1657_v18   ;;  %v3789_v18 = vpop.permute.xlu0 %122 }
  0xbf   :  { %1875 = vperm.xlu1 %3135, %v1681_v20   ;;  %v1669_v20 = vld [vmem:[%s5204_s6 + $0xc0] sm:$0xff] }
  0xc2   :  { %1750 = vperm.xlu0 %3134, %v1656_v22  }
  0xc3   :  { %1870 = vperm.xlu1 %3135, %v1680_v23   ;;  %v3796_v23 = vpop.permute.xlu1 %202 }
  0xc6   :  { %1745 = vperm.xlu0 %3134, %v1655_v25  }
  0xc7   :  { %1865 = vperm.xlu1 %3135, %v1679_v26   ;;  %v1668_v26 = vld [vmem:[%s5204_s6 + $0xb8] sm:$0xff] }
  0xca   :  { %1740 = vperm.xlu0 %3134, %v1654_v28   ;;  %v1692_v28 = vld [vmem:[%s5204_s6 + $0x178] sm:$0xff] }
  0xcb   :  { %1860 = vperm.xlu1 %3135, %v1678_v30  }
  0xce   :  { %1735 = vperm.xlu0 %3134, %v1653_v32   ;;  %v3804_v32 = vpop.permute.xlu0 %117 }
  0xcf   :  { %1855 = vperm.xlu1 %3135, %v1677_v33   ;;  %5217 = vst [vmem:[#allocation5_spill] sm:$0xff] %v3804_v32 }
  0xd2   :  { %1730 = vperm.xlu0 %3134, %v1652_v35   ;;  %v1667_v35 = vld [vmem:[%s5204_s6 + $0xb0] sm:$0xff] }
  0xd3   :  { %1850 = vperm.xlu1 %3135, %v1676_v36   ;;  %v3708_v38 = vpop.f32.mrf.mxu0  ;;  %v1691_v36 = vld [vmem:[%s5204_s6 + $0x170] sm:$0xff] }
  0xd4   :  { %5214 = vst [vmem:[#allocation2_spill] sm:$0xff] %v3708_v38 }
  0xd5   :  { %v3718_v42 = vpop.f32.mrf.mxu0 }
  0xd6   :  { %5215 = vst [vmem:[#allocation3_spill] sm:$0xff] %v3718_v42  ;;  %1725 = vperm.xlu0 %3134, %v1651_v39   ;;  %v3814_v39 = vpop.permute.xlu1 %197 }
  0xd7   :  { %1845 = vperm.xlu1 %3135, %v1675_v41   ;;  %v3722_v44 = vpop.f32.mrf.mxu0  ;;  %5219 = vst [vmem:[#allocation7_spill] sm:$0xff] %v3814_v39 }
  0xd9   :  { %v3730_v47 = vpop.f32.mrf.mxu0 }
  0xda   :  { %5216 = vst [vmem:[#allocation4_spill] sm:$0xff] %v3730_v47  ;;  %1720 = vperm.xlu0 %3134, %v1650_v45  }
  0xdb   :  { %1840 = vperm.xlu1 %3135, %v1674_v46   ;;  %v3734_v49 = vpop.f32.mrf.mxu0  ;;  %v1666_v46 = vld [vmem:[%s5204_s6 + $0xa8] sm:$0xff] }
  0xdd   :  { %v3744_v53 = vpop.f32.mrf.mxu0 }
  0xde   :  { %1715 = vperm.xlu0 %3134, %v1649_v50   ;;  %v3823_v50 = vpop.permute.xlu0 %112 }
  0xdf   :  { %1835 = vperm.xlu1 %3135, %v1673_v51   ;;  %v3746_v54 = vpop.f32.mrf.mxu0  ;;  %5221 = vst [vmem:[#allocation9_spill] sm:$0xff] %v3823_v50  ;;  %v1690_v51 = vld [vmem:[%s5204_s6 + $0x168] sm:$0xff] }
  0xe1   :  { %v3756_v59 = vpop.f32.mrf.mxu0 }
  0xe2   :  { %1710 = vperm.xlu0 %3134, %v1648_v55  }
  0xe3   :  { %1830 = vperm.xlu1 %3135, %v1672_v58   ;;  %v3760_v63 = vpop.f32.mrf.mxu0  ;;  %v3830_v58 = vpop.permute.xlu1 %192 }
  0xe4   :  { %5222 = vst [vmem:[#allocation10_spill] sm:$0xff] %v3830_v58 }
  0xe5   :  { %v3768_v4 = vpop.f32.mrf.mxu0 }
  0xe6   :  { %1705 = vperm.xlu0 %3134, %v1647_v1  }
  0xe7   :  { %1825 = vperm.xlu1 %3135, %v1671_v2   ;;  %v3772_v7 = vpop.f32.mrf.mxu0  ;;  %v1665_v2 = vld [vmem:[%s5204_s6 + $0xa0] sm:$0xff] }
  0xe9   :  { %v3782_v14 = vpop.f32.mrf.mxu0 }
  0xea   :  { %1700 = vperm.xlu0 %3134, %v1646_v9   ;;  %v1689_v9 = vld [vmem:[%s5204_s6 + $0x160] sm:$0xff] }
  0xeb   :  { %1820 = vperm.xlu1 %3135, %v1670_v11   ;;  %v3784_v15 = vpop.f32.mrf.mxu0 }
  0xed   :  { %v3794_v22 = vpop.f32.mrf.mxu0 }
  0xee   :  { %1695 = vperm.xlu0 %3134, %v1645_v16   ;;  %v3842_v16 = vpop.permute.xlu0 %861 }
  0xef   :  { %1815 = vperm.xlu1 %3135, %v1669_v20   ;;  %v2927_v25 = vpop.f32.mrf.mxu0  ;;  %5223 = vst [vmem:[#allocation11_spill] sm:$0xff] %v3842_v16 }
  0xf1   :  { %v503_v30 = vpop.f32.mrf.mxu0 }
  0xf2   :  { %1810 = vperm.xlu0 %3134, %v1668_v26   ;;  %v1664_v26 = vld [vmem:[%s5204_s6 + $0x98] sm:$0xff]  ;;  %v504_v38 = vadd.f32 %v503_v30, %v3599_v60 }
  0xf3   :  { %1930 = vperm.xlu1 %3135, %v1692_v28   ;;  %v3806_v33 = vpop.f32.mrf.mxu0  ;;  %v1688_v28 = vld [vmem:[%s5204_s6 + $0x158] sm:$0xff] }
  0xf4   :  { %5218 = vst [vmem:[#allocation6_spill] sm:$0xff] %v3806_v33 }
  0xf5   :  { %v3816_v41 = vpop.f32.mrf.mxu0 }
  0xf6   :  { %5220 = vst [vmem:[#allocation8_spill] sm:$0xff] %v3816_v41  ;;  %1805 = vperm.xlu0 %3134, %v1667_v35   ;;  %v3852_v35 = vpop.permute.xlu1 %1001  ;;  %v509_v41 = vadd.f32 %v2927_v25, %v3591_v57  ;;  %v499_v57 = vadd.f32 %v3784_v15, %v3617_v3  ;;  %v494_v3 = vadd.f32 %v3794_v22, %v3630_v8  ;;  %v606_v15 = vmul.f32 0.2, %v504_v38  ;;  %v2605_v8 = vld [vmem:[%s5207_s10] sm:$0x3] }
  0xf7   :  { %1925 = vperm.xlu1 %3135, %v1691_v36   ;;  %v3818_v45 = vpop.f32.mrf.mxu0  ;;  %5224 = vst [vmem:[#allocation12_spill] sm:$0xff] %v3852_v35 }
  0xf8   :  { %v607_v25 = vmul.f32 0.2, %v509_v41 }
  0xf9   :  { %v3828_v55 = vpop.f32.mrf.mxu0 }
  0xfa   :  { %1800 = vperm.xlu0 %3134, %v1666_v46   ;;  %v3864_v42 = vpop.permute.xlu1 %996 }
  0xfb   :  { %1920 = vperm.xlu1 %3135, %v1690_v51   ;;  %v3832_v1 = vpop.f32.mrf.mxu0  ;;  %v1663_v51 = vld [vmem:[%s5204_s6 + $0x90] sm:$0xff]  ;;  %5226 = vst [vmem:[#allocation14_spill] sm:$0xff] %v3864_v42  ;;  %v1685_v42 = vld [vmem:[%s5204_s6 + $0x140] sm:$0xff] }
  0xfd   :  { %v3840_v11 = vpop.f32.mrf.mxu0 }
  0xfe   :  { %1795 = vperm.xlu0 %3134, %v1665_v2   ;;  %v3859_v2 = vpop.permute.xlu0 %856  ;;  %v3881_v58 = vpop.permute.xlu1 %991 }
  0xff   :  { %1915 = vperm.xlu1 %3135, %v1689_v9   ;;  %v3844_v20 = vpop.f32.mrf.mxu0  ;;  %5225 = vst [vmem:[#allocation13_spill] sm:$0xff] %v3859_v2  ;;  %v1687_v9 = vld [vmem:[%s5204_s6 + $0x150] sm:$0xff]  ;;  %5228 = vst [vmem:[#allocation16_spill] sm:$0xff] %v3881_v58 }
 0x101   :  { %v3854_v36 = vpop.f32.mrf.mxu0 }
 0x102   :  { %1790 = vperm.xlu0 %3134, %v1664_v26   ;;  %v1662_v26 = vld [vmem:[%s5204_s6 + $0x88] sm:$0xff]  ;;  %v3872_v2 = vpop.permute.xlu0 %851 }
 0x103   :  { %1910 = vperm.xlu1 %3135, %v1688_v28   ;;  %v2942_v46 = vpop.f32.mrf.mxu0  ;;  %v1686_v28 = vld [vmem:[%s5204_s6 + $0x148] sm:$0xff]  ;;  %5227 = vst [vmem:[#allocation15_spill] sm:$0xff] %v3872_v2 }
 0x105   :  { %v553_v16 = vpop.f32.mrf.mxu0 }
 0x106   :  { %1785 = vperm.xlu0 %3134, %v1663_v51   ;;  %v3890_v33 = vpop.permute.xlu0 %846 }
 0x107   :  { %1905 = vperm.xlu1 %3135, %v1687_v9   ;;  %v2945_v35 = vpop.f32.mrf.mxu0  ;;  %v1661_v9 = vld [vmem:[%s5204_s6 + $0x80] sm:$0xff]  ;;  %5229 = vst [vmem:[#allocation17_spill] sm:$0xff] %v3890_v33  ;;  %v3901_v33 = vpop.permute.xlu1 %986 }
 0x108   :  { %v569_v30 = vadd.f32 %v2945_v35, %v3654_v17  ;;  %5230 = vst [vmem:[#allocation18_spill] sm:$0xff] %v3901_v33  ;;  %v559_v33 = vadd.f32 %v2942_v46, %v3680_v27  ;;  %v474_v27 = vadd.f32 %v3768_v4, %v3685_v29 }
 0x109   :  { %v563_v50 = vpop.f32.mrf.mxu0 }
 0x10a   :  { %1780 = vperm.xlu0 %3134, %v1662_v26   ;;  %v564_v22 = vadd.f32 %v563_v50, %v3664_v21  ;;  %v479_v21 = vadd.f32 %v3760_v63, %v3672_v24 }
 0x10b   :  { %1900 = vperm.xlu1 %3135, %v1686_v28   ;;  %v2948_v51 = vpop.f32.mrf.mxu0  ;;  %v2508_v28 = vld [vmem:[%s5206_s8 + $0x8] sm:$0xff] }
 0x10c   :  { %v579_v2 = vadd.f32 %v2948_v51, %v3625_v6  ;;  %v2507_v6 = vld [vmem:[%s5206_s8] sm:$0xff]  ;;  %v618_v47 = vmul.f32 0.2, %v564_v22  ;;  %v601_v63 = vmul.f32 0.2, %v479_v21 }
 0x10d   :  { %v573_v32 = vpop.f32.mrf.mxu0 }
 0x10e   :  { %1775 = vperm.xlu0 %3134, %v1661_v9   ;;  %v574_v58 = vadd.f32 %v573_v32, %v3635_v10  ;;  %v621_v51 = vmul.f32 0.2, %v579_v2  ;;  %v605_v10 = vmul.f32 0.2, %v499_v57  ;;  %v639_v32 = vmax.f32 %v509_v41, %v607_v25 }
 0x10f   :  { %1895 = vperm.xlu1 %3135, %v1685_v42   ;;  %v2951_v26 = vpop.f32.mrf.mxu0  ;;  %v650_v4 = vmax.f32 %v564_v22, %v618_v47  ;;  %v633_v47 = vmax.f32 %v479_v21, %v601_v63 }
 0x110   :  { %v589_v60 = vadd.f32 %v2951_v26, %v3604_v62  ;;  %v489_v62 = vadd.f32 %v3772_v7, %v3643_v13  ;;  %v620_v17 = vmul.f32 0.2, %v574_v58  ;;  %v3912_v13 = vpop.permute.xlu0 %841  ;;  %v619_v7 = vmul.f32 0.2, %v569_v30 }
 0x111   :  { %v583_v42 = vpop.f32.mrf.mxu0  ;;  %v653_v41 = vmax.f32 %v579_v2, %v621_v51  ;;  %v617_v2 = vmul.f32 0.2, %v559_v33 }
 0x112   :  { %v623_v9 = vmul.f32 0.2, %v589_v60  ;;  %v584_v39 = vadd.f32 %v583_v42, %v3609_v0  ;;  %2516 = vperm.xlu0 %3134, %v2508_v28   ;;  %v484_v0 = vadd.f32 %v3782_v14, %v3659_v19  ;;  %v604_v28 = vmul.f32 0.2, %v494_v3 }
 0x113   :  { %2511 = vperm.xlu1 %3135, %v2507_v6   ;;  %v638_v42 = vmax.f32 %v504_v38, %v606_v15  ;;  %v603_v50 = vmul.f32 0.2, %v489_v62  ;;  %v652_v19 = vmax.f32 %v574_v58, %v620_v17  ;;  %v651_v15 = vmax.f32 %v569_v30, %v619_v7 }
 0x114   :  { %v655_v35 = vmax.f32 %v589_v60, %v623_v9  ;;  %v622_v26 = vmul.f32 0.2, %v584_v39  ;;  %v637_v60 = vmax.f32 %v499_v57, %v605_v10  ;;  %v554_v9 = vadd.f32 %v553_v16, %v3690_v31 }
 0x115   :  { %v602_v14 = vmul.f32 0.2, %v484_v0  ;;  %v636_v46 = vmax.f32 %v494_v3, %v604_v28  ;;  %v469_v31 = vadd.f32 %v3746_v54, %v3698_v34  ;;  %v635_v58 = vmax.f32 %v489_v62, %v603_v50  ;;  %v5232_v28 = vld [vmem:[#allocation7_spill] sm:$0xff]  ;;  %v5236_v50 = vld [vmem:[#allocation10_spill] sm:$0xff] }
 0x116   :  { %v654_v25 = vmax.f32 %v584_v39, %v622_v26  ;;  %2608 = vperm.xlu0 %3134, %v2605_v8   ;;  %v671_v6 = vmax.f32 %v639_v32, %v655_v35  ;;  %v549_v39 = vadd.f32 %v3844_v20, %v3706_v37  ;;  %v669_v24 = vmax.f32 %v637_v60, %v653_v41  ;;  %v5231_v26 = vld [vmem:[#allocation4_spill] sm:$0xff] }
 0x117   :  { %v544_v16 = vadd.f32 %v3854_v36, %v3720_v43  ;;  %v616_v29 = vmul.f32 0.2, %v554_v9  ;;  %v668_v57 = vmax.f32 %v636_v46, %v652_v19  ;;  %v464_v37 = vadd.f32 %v3756_v59, %v3713_v40  ;;  %v5237_v60 = vld [vmem:[#allocation8_spill] sm:$0xff] }
 0x118   :  { %2952 = vmatprep.subr.mxu1 %v671_v6  ;;  %v670_v38 = vmax.f32 %v638_v42, %v654_v25  ;;  %v600_v20 = vmul.f32 0.2, %v474_v27  ;;  %v634_v3 = vmax.f32 %v484_v0, %v602_v14  ;;  %v539_v30 = vadd.f32 %v3832_v1, %v3742_v52  ;;  %v5233_v42 = vld [vmem:[#allocation6_spill] sm:$0xff]  ;;  %v5234_v25 = vld [vmem:[#allocation5_spill] sm:$0xff]  ;;  %v5239_v14 = vld [vmem:[#allocation3_spill] sm:$0xff] }
 0x119   :  { %2953 = vmatpush3.msra.mxu1 %v671_v6  ;;  %v615_v34 = vmul.f32 0.2, %v549_v39  ;;  %v649_v54 = vmax.f32 %v559_v33, %v617_v2  ;;  %v667_v51 = vmax.f32 %v635_v58, %v651_v15  ;;  %v459_v43 = vadd.f32 %v3734_v49, %v3732_v48  ;;  %v5235_v6 = vld [vmem:[#allocation2_spill] sm:$0xff] }
 0x11a   :  { %2954 = vmatprep.subr.mxu1 %v670_v38  ;;  %v599_v36 = vmul.f32 0.2, %v469_v31  ;;  %v534_v62 = vadd.f32 %v3840_v11, %v3758_v61  ;;  %v614_v40 = vmul.f32 0.2, %v544_v16  ;;  %v648_v59 = vmax.f32 %v554_v9, %v616_v29 }
 0x11b   :  { %2955 = vmatpush3.msra.mxu1 %v670_v38  ;;  %v666_v10 = vmax.f32 %v634_v3, %v650_v4  ;;  %v454_v52 = vadd.f32 %v3744_v53, %v3751_v56  ;;  %v598_v1 = vmul.f32 0.2, %v464_v37  ;;  %v632_v33 = vmax.f32 %v474_v27, %v600_v20  ;;  %v5238_v27 = vld [vmem:[#allocation9_spill] sm:$0xff] }
 0x11c   :  { %2956 = vmatprep.subr.mxu1 %v669_v24  ;;  %v529_v32 = vadd.f32 %v3818_v45, %v3780_v12  ;;  %v613_v48 = vmul.f32 0.2, %v539_v30  ;;  %v647_v49 = vmax.f32 %v549_v39, %v615_v34  ;;  %v665_v8 = vmax.f32 %v633_v47, %v649_v54  ;;  %v673_v47 = vld [vmem:[%s5205_s3 + $0x8] sm:$0xff] }
 0x11d   :  { %2957 = vmatpush3.msra.mxu1 %v669_v24  ;;  %v449_v61 = vadd.f32 %v3722_v44, %v3770_v5  ;;  %v597_v11 = vmul.f32 0.2, %v459_v43  ;;  %v631_v22 = vmax.f32 %v469_v31, %v599_v36  ;;  %v524_v17 = vadd.f32 %v3828_v55, %v3796_v23 }
 0x11e   :  { %2958 = vmatprep.subr.mxu1 %v668_v57  ;;  %v612_v53 = vmul.f32 0.2, %v534_v62  ;;  %v646_v56 = vmax.f32 %v544_v16, %v614_v40  ;;  %v664_v35 = vmax.f32 %v632_v33, %v648_v59  ;;  %v444_v12 = vadd.f32 %v5231_v26, %v3789_v18  ;;  %v675_v40 = vld [vmem:[%s5205_s3 + $0x18] sm:$0xff]  ;;  %v676_v59 = vld [vmem:[%s5205_s3 + $0x20] sm:$0xff] }
 0x11f   :  { %2959 = vmatpush3.msra.mxu1 %v668_v57  ;;  %v596_v45 = vmul.f32 0.2, %v454_v52  ;;  %v630_v0 = vmax.f32 %v464_v37, %v598_v1  ;;  %v519_v7 = vadd.f32 %v5233_v42, %v5232_v28  ;;  %v611_v44 = vmul.f32 0.2, %v529_v32  ;;  %v679_v1 = vld [vmem:[%s5205_s3 + $0x38] sm:$0xff]  ;;  %v680_v33 = vld [vmem:[%s5205_s3 + $0x40] sm:$0xff] }
 0x120   :  { %2960 = vmatprep.subr.mxu1 %v667_v51  ;;  %v645_v5 = vmax.f32 %v539_v30, %v613_v48  ;;  %v663_v41 = vmax.f32 %v631_v22, %v647_v49  ;;  %v439_v23 = vadd.f32 %v5235_v6, %v5234_v25  ;;  %v595_v55 = vmul.f32 0.2, %v449_v61  ;;  %v682_v48 = vld [vmem:[%s5205_s3 + $0x50] sm:$0xff]  ;;  %v683_v49 = vld [vmem:[%s5205_s3 + $0x58] sm:$0xff]  ;;  %v692_v26 = vld [vmem:[%s5205_s3 + $0xa0] sm:$0xff] }
 0x121   :  { %2961 = vmatpush3.msra.mxu1 %v667_v51  ;;  %v629_v21 = vmax.f32 %v459_v43, %v597_v11  ;;  %v514_v9 = vadd.f32 %v5237_v60, %v5236_v50  ;;  %v610_v18 = vmul.f32 0.2, %v524_v17  ;;  %v644_v19 = vmax.f32 %v534_v62, %v612_v53  ;;  %v674_v62 = vld [vmem:[%s5205_s3 + $0x10] sm:$0xff]  ;;  %v687_v22 = vld [vmem:[%s5205_s3 + $0x78] sm:$0xff]  ;;  %v689_v53 = vld [vmem:[%s5205_s3 + $0x88] sm:$0xff] }
 0x122   :  { %2962 = vmatprep.subr.mxu1 %v666_v10  ;;  %v662_v38 = vmax.f32 %v630_v0, %v646_v56  ;;  %v434_v46 = vadd.f32 %v5239_v14, %v5238_v27  ;;  %v594_v39 = vmul.f32 0.2, %v444_v12  ;;  %v628_v2 = vmax.f32 %v454_v52, %v596_v45  ;;  %v678_v52 = vld [vmem:[%s5205_s3 + $0x30] sm:$0xff]  ;;  %v695_v0 = vld [vmem:[%s5205_s3 + $0xb8] sm:$0xff]  ;;  %v696_v28 = vld [vmem:[%s5205_s3 + $0xc0] sm:$0xff] }
 0x123   :  { %2963 = vmatpush3.msra.mxu1 %v666_v10  ;;  %v609_v15 = vmul.f32 0.2, %v519_v7  ;;  %v643_v24 = vmax.f32 %v529_v32, %v611_v44  ;;  %v661_v31 = vmax.f32 %v629_v21, %v645_v5  ;;  %v593_v63 = vmul.f32 0.2, %v439_v23  ;;  %v677_v10 = vld [vmem:[%s5205_s3 + $0x28] sm:$0xff]  ;;  %v686_v11 = vld [vmem:[%s5205_s3 + $0x70] sm:$0xff] }
 0x124   :  { %2964 = vmatprep.subr.mxu1 %v665_v8  ;;  %v627_v58 = vmax.f32 %v449_v61, %v595_v55  ;;  %v608_v16 = vmul.f32 0.2, %v514_v9  ;;  %v642_v29 = vmax.f32 %v524_v17, %v610_v18  ;;  %v660_v4 = vmax.f32 %v628_v2, %v644_v19  ;;  %v681_v32 = vld [vmem:[%s5205_s3 + $0x48] sm:$0xff]  ;;  %v688_v17 = vld [vmem:[%s5205_s3 + $0x80] sm:$0xff]  ;;  %v690_v56 = vld [vmem:[%s5205_s3 + $0x90] sm:$0xff] }
 0x125   :  { %2965 = vmatpush3.msra.mxu1 %v665_v8  ;;  %v592_v57 = vmul.f32 0.2, %v434_v46  ;;  %v626_v37 = vmax.f32 %v444_v12, %v594_v39  ;;  %v641_v20 = vmax.f32 %v519_v7, %v609_v15  ;;  %v625_v30 = vmax.f32 %v439_v23, %v593_v63  ;;  %v684_v8 = vld [vmem:[%s5205_s3 + $0x60] sm:$0xff]  ;;  %v685_v61 = vld [vmem:[%s5205_s3 + $0x68] sm:$0xff]  ;;  %v694_v45 = vld [vmem:[%s5205_s3 + $0xb0] sm:$0xff] }
 0x126   :  { %2966 = vmatprep.subr.mxu1 %v664_v35  ;;  %v659_v3 = vmax.f32 %v627_v58, %v643_v24  ;;  %v640_v34 = vmax.f32 %v514_v9, %v608_v16  ;;  %v693_v12 = vld [vmem:[%s5205_s3 + $0xa8] sm:$0xff]  ;;  %v698_v7 = vld [vmem:[%s5205_s3 + $0xd0] sm:$0xff]  ;;  %v699_v44 = vld [vmem:[%s5205_s3 + $0xd8] sm:$0xff] }
 0x127   :  { %2967 = vmatpush3.msra.mxu1 %v664_v35  ;;  %v658_v54 = vmax.f32 %v626_v37, %v642_v29  ;;  %v624_v51 = vmax.f32 %v434_v46, %v592_v57  ;;  %v657_v43 = vmax.f32 %v625_v30, %v641_v20  ;;  %v691_v35 = vld [vmem:[%s5205_s3 + $0x98] sm:$0xff]  ;;  %v697_v42 = vld [vmem:[%s5205_s3 + $0xc8] sm:$0xff]  ;;  %v700_v5 = vld [vmem:[%s5205_s3 + $0xe0] sm:$0xff]  ;;  %v5212_v20 = vmov 0.0  }
 0x128   :  { %2968 = vmatprep.subr.mxu1 %v663_v41  ;;  %v702_v25 = vld [vmem:[%s5205_s3 + $0xf0] sm:$0xff]  ;;  %v703_v6 = vld [vmem:[%s5205_s3 + $0xf8] sm:$0xff]  ;;  %v704_v23 = vld [vmem:[%s5205_s3 + $0x100] sm:$0xff]  ;;  %2078 = vmatprep.subr.mxu0 %v5212_v20 }
 0x129   :  { %2969 = vmatpush3.msra.mxu1 %v663_v41  ;;  %v656_v36 = vmax.f32 %v624_v51, %v640_v34  ;;  %v701_v41 = vld [vmem:[%s5205_s3 + $0xe8] sm:$0xff]  ;;  %v706_v21 = vld [vmem:[%s5205_s3 + $0x110] sm:$0xff]  ;;  %v707_v50 = vld [vmem:[%s5205_s3 + $0x118] sm:$0xff] }
 0x12a   :  { %2970 = vmatprep.subr.mxu1 %v662_v38  ;;  %v705_v55 = vld [vmem:[%s5205_s3 + $0x108] sm:$0xff]  ;;  %v708_v60 = vld [vmem:[%s5205_s3 + $0x120] sm:$0xff]  ;;  %v710_v18 = vld [vmem:[%s5205_s3 + $0x130] sm:$0xff] }
 0x12b   :  { %2971 = vmatpush3.msra.mxu1 %v662_v38  ;;  %v709_v9 = vld [vmem:[%s5205_s3 + $0x128] sm:$0xff]  ;;  %v711_v19 = vld [vmem:[%s5205_s3 + $0x138] sm:$0xff]  ;;  %v712_v38 = vld [vmem:[%s5205_s3 + $0x140] sm:$0xff] }
 0x12c   :  { %2972 = vmatprep.subr.mxu1 %v661_v31  ;;  %v713_v27 = vld [vmem:[%s5205_s3 + $0x148] sm:$0xff]  ;;  %v714_v14 = vld [vmem:[%s5205_s3 + $0x150] sm:$0xff]  ;;  %v715_v46 = vld [vmem:[%s5205_s3 + $0x158] sm:$0xff] }
 0x12d   :  { %2973 = vmatpush3.msra.mxu1 %v661_v31  ;;  %v716_v39 = vld [vmem:[%s5205_s3 + $0x160] sm:$0xff]  ;;  %v717_v2 = vld [vmem:[%s5205_s3 + $0x168] sm:$0xff]  ;;  %v718_v15 = vld [vmem:[%s5205_s3 + $0x170] sm:$0xff] }
 0x12e   :  { %2974 = vmatprep.subr.mxu1 %v660_v4  ;;  %v719_v24 = vld [vmem:[%s5205_s3 + $0x178] sm:$0xff]  ;;  %v720_v31 = vld [vmem:[%s5205_s3 + $0x180] sm:$0xff]  ;;  %v721_v63 = vld [vmem:[%s5205_s3 + $0x188] sm:$0xff] }
 0x12f   :  { %2975 = vmatpush3.msra.mxu1 %v660_v4  ;;  %v722_v58 = vld [vmem:[%s5205_s3 + $0x190] sm:$0xff]  ;;  %v723_v16 = vld [vmem:[%s5205_s3 + $0x198] sm:$0xff]  ;;  %v724_v29 = vld [vmem:[%s5205_s3 + $0x1a0] sm:$0xff] }
 0x130   :  { %2976 = vmatprep.subr.mxu1 %v659_v3  ;;  %v725_v4 = vld [vmem:[%s5205_s3 + $0x1a8] sm:$0xff]  ;;  %v726_v57 = vld [vmem:[%s5205_s3 + $0x1b0] sm:$0xff]  ;;  %v727_v37 = vld [vmem:[%s5205_s3 + $0x1b8] sm:$0xff] }
 0x131   :  { %2977 = vmatpush3.msra.mxu1 %v659_v3  ;;  %v4118_v3 = vpop.permute.xlu1 %981 }
 0x132   :  { %2978 = vmatprep.subr.mxu1 %v658_v54 }
 0x133   :  { %2979 = vmatpush3.msra.mxu1 %v658_v54  ;;  %v4124_v54 = vpop.permute.xlu0 %836 }
 0x134   :  { %2980 = vmatprep.subr.mxu1 %v657_v43 }
 0x135   :  { %2981 = vmatpush3.msra.mxu1 %v657_v43  ;;  %v4120_v30 = vpop.permute.xlu1 %976 }
 0x136   :  { %2982 = vmatprep.subr.mxu1 %v656_v36 }
 0x137   :  { %2983 = vmatpush3.msra.mxu1 %v656_v36 }
 0x138   :  { %2985 = vmatmul.mubr.f32.vlgmr.msra.gmra.mxu1 %v673_v47  ;;  %3075 = vmatprep.subr.mxu1 %v5212_v20 }
 0x139   :  { %2987 = vmatprep.mubr.f32.mxu1 %v674_v62  ;;  %v4130_v36 = vpop.permute.xlu1 %971  ;;  %v4134_v62 = vpop.permute.xlu0 %831 }
 0x13c   :  { %2988 = vmatmul.mubr.f32.gmra.mxu1 %v675_v40 }
 0x13d   :  { %2990 = vmatprep.mubr.f32.mxu1 %v676_v59 }
 0x140   :  { %2991 = vmatmul.mubr.f32.gmra.mxu1 %v677_v10  ;;  %v4140_v10 = vpop.permute.xlu1 %966 }
 0x141   :  { %2993 = vmatprep.mubr.f32.mxu1 %v678_v52 }
 0x144   :  { %2994 = vmatmul.mubr.f32.gmra.mxu1 %v679_v1  ;;  %v4144_v1 = vpop.permute.xlu0 %826 }
 0x145   :  { %2996 = vmatprep.mubr.f32.mxu1 %v680_v33 }
 0x148   :  { %2997 = vmatmul.mubr.f32.gmra.mxu1 %v681_v32 }
 0x149   :  { %2999 = vmatprep.mubr.f32.mxu1 %v682_v48  ;;  %v4150_v48 = vpop.permute.xlu1 %961 }
 0x14c   :  { %3000 = vmatmul.mubr.f32.gmra.mxu1 %v683_v49 }
 0x14d   :  { %3002 = vmatprep.mubr.f32.mxu1 %v684_v8  ;;  %v1550_v8 = vld [vmem:[%s5208_s5 + $0x8] sm:$0xff] }
 0x14e   :  { %2722 = vmatprep.mubr.msk.f32.mxu0 %vm1933_vm1, %v1550_v8 }
 0x150   :  { %3003 = vmatmul.mubr.f32.gmra.mxu1 %v685_v61  ;;  %v1618_v61 = vld [vmem:[%s5208_s5 + $0x228] sm:$0xff] }
 0x151   :  { %3005 = vmatprep.mubr.f32.mxu1 %v686_v11  ;;  %v4160_v11 = vpop.permute.xlu0 %821 }
 0x154   :  { %3006 = vmatmul.mubr.f32.gmra.mxu1 %v687_v22 }
 0x155   :  { %3008 = vmatprep.mubr.f32.mxu1 %v688_v17 }
 0x158   :  { %3009 = vmatmul.mubr.f32.gmra.mxu1 %v689_v53  ;;  %v4168_v53 = vpop.permute.xlu1 %956 }
 0x159   :  { %3011 = vmatprep.mubr.f32.mxu1 %v690_v56 }
 0x15c   :  { %3012 = vmatmul.mubr.f32.gmra.mxu1 %v691_v35  ;;  %v4170_v35 = vpop.permute.xlu0 %816 }
 0x15d   :  { %3014 = vmatprep.mubr.f32.mxu1 %v692_v26 }
 0x160   :  { %3015 = vmatmul.mubr.f32.gmra.mxu1 %v693_v12 }
 0x161   :  { %3017 = vmatprep.mubr.f32.mxu1 %v694_v45  ;;  %v4172_v45 = vpop.permute.xlu1 %951 }
 0x164   :  { %3018 = vmatmul.mubr.f32.gmra.mxu1 %v695_v0 }
 0x165   :  { %3020 = vmatprep.mubr.f32.mxu1 %v696_v28  ;;  %v4174_v28 = vpop.permute.xlu0 %811 }
 0x168   :  { %3021 = vmatmul.mubr.f32.gmra.mxu1 %v697_v42 }
 0x169   :  { %3023 = vmatprep.mubr.f32.mxu1 %v698_v7 }
 0x16c   :  { %3024 = vmatmul.mubr.f32.gmra.mxu1 %v699_v44  ;;  %v4180_v44 = vpop.permute.xlu1 %946 }
 0x16d   :  { %3026 = vmatprep.mubr.f32.mxu1 %v700_v5 }
 0x170   :  { %3027 = vmatmul.mubr.f32.gmra.mxu1 %v701_v41  ;;  %v4184_v41 = vpop.permute.xlu0 %806 }
 0x171   :  { %3029 = vmatprep.mubr.f32.mxu1 %v702_v25 }
 0x174   :  { %3030 = vmatmul.mubr.f32.gmra.mxu1 %v703_v6 }
 0x175   :  { %3032 = vmatprep.mubr.f32.mxu1 %v704_v23  ;;  %v4190_v23 = vpop.permute.xlu1 %941 }
 0x178   :  { %3033 = vmatmul.mubr.f32.gmra.mxu1 %v705_v55 }
 0x179   :  { %3035 = vmatprep.mubr.f32.mxu1 %v706_v21  ;;  %v4194_v21 = vpop.permute.xlu0 %801 }
 0x17c   :  { %3036 = vmatmul.mubr.f32.gmra.mxu1 %v707_v50 }
 0x17d   :  { %3038 = vmatprep.mubr.f32.mxu1 %v708_v60 }
 0x180   :  { %3039 = vmatmul.mubr.f32.gmra.mxu1 %v709_v9  ;;  %v4200_v9 = vpop.permute.xlu1 %936 }
 0x181   :  { %3041 = vmatprep.mubr.f32.mxu1 %v710_v18 }
 0x184   :  { %3042 = vmatmul.mubr.f32.gmra.mxu1 %v711_v19  ;;  %v4204_v19 = vpop.permute.xlu0 %796 }
 0x185   :  { %3044 = vmatprep.mubr.f32.mxu1 %v712_v38 }
 0x188   :  { %3045 = vmatmul.mubr.f32.gmra.mxu1 %v713_v27 }
 0x189   :  { %3047 = vmatprep.mubr.f32.mxu1 %v714_v14  ;;  %v4210_v14 = vpop.permute.xlu1 %931 }
 0x18a   :  { %5253 = vst [vmem:[#allocation23_spill] sm:$0xff] %v4210_v14 }
 0x18c   :  { %3048 = vmatmul.mubr.f32.gmra.mxu1 %v715_v46 }
 0x18d   :  { %3050 = vmatprep.mubr.f32.mxu1 %v716_v39  ;;  %v4214_v39 = vpop.permute.xlu0 %791 }
 0x18e   :  { %5255 = vst [vmem:[#allocation25_spill] sm:$0xff] %v4214_v39  ;;  %v5273_v39 = vld [vmem:[#allocation12_spill] sm:$0xff] }
 0x190   :  { %3051 = vmatmul.mubr.f32.gmra.mxu1 %v717_v2 }
 0x191   :  { %3053 = vmatprep.mubr.f32.mxu1 %v718_v15 }
 0x194   :  { %3054 = vmatmul.mubr.f32.gmra.mxu1 %v719_v24  ;;  %v4220_v24 = vpop.permute.xlu1 %926 }
 0x195   :  { %3056 = vmatprep.mubr.f32.mxu1 %v720_v31  ;;  %5258 = vst [vmem:[#allocation28_spill] sm:$0xff] %v4220_v24 }
 0x198   :  { %3057 = vmatmul.mubr.f32.gmra.mxu1 %v721_v63  ;;  %v4224_v63 = vpop.permute.xlu0 %786 }
 0x199   :  { %3059 = vmatprep.mubr.f32.mxu1 %v722_v58  ;;  %5259 = vst [vmem:[#allocation29_spill] sm:$0xff] %v4224_v63 }
 0x19c   :  { %3060 = vmatmul.mubr.f32.gmra.mxu1 %v723_v16 }
 0x19d   :  { %3062 = vmatprep.mubr.f32.mxu1 %v724_v29  ;;  %v4230_v29 = vpop.permute.xlu1 %1061 }
 0x19e   :  { %5260 = vst [vmem:[#allocation30_spill] sm:$0xff] %v4230_v29 }
 0x1a0   :  { %3063 = vmatmul.mubr.f32.gmra.mxu1 %v725_v4 }
 0x1a1   :  { %3065 = vmatprep.mubr.f32.mxu1 %v726_v57  ;;  %v4234_v57 = vpop.permute.xlu0 %921 }
 0x1a2   :  { %5261 = vst [vmem:[#allocation31_spill] sm:$0xff] %v4234_v57  ;;  %v5268_v57 = vld [vmem:[#allocation16_spill] sm:$0xff] }
 0x1a4   :  { %3066 = vmatmul.mubr.f32.gmra.mxu1 %v727_v37 }
 0x1a5   :  { %2756 = vmatprep.mubr.msk.f32.mxu1 %vm1933_vm1, %v1618_v61  ;;  %v4240_v61 = vpop.permute.xlu1 %1056 }
 0x1a6   :  { %5262 = vst [vmem:[#allocation32_spill] sm:$0xff] %v4240_v61  ;;  %v5270_v61 = vld [vmem:[#allocation15_spill] sm:$0xff] }
 0x1f8   :  { %v4122_v34 = vpop.f32.mrf.mxu1 }
 0x1f9   :  { %5240 = vst [vmem:[#allocation4_spill] sm:$0xff] %v4122_v34 }
 0x1fa   :  { %v4126_v51 = vpop.f32.mrf.mxu1 }
 0x1fb   :  { %5241 = vst [vmem:[#allocation7_spill] sm:$0xff] %v4126_v51 }
 0x1fc   :  { %v4128_v43 = vpop.f32.mrf.mxu1 }
 0x1fe   :  { %v4132_v47 = vpop.f32.mrf.mxu1 }
 0x200   :  { %v4136_v40 = vpop.f32.mrf.mxu1 }
 0x202   :  { %v4138_v59 = vpop.f32.mrf.mxu1 }
 0x204   :  { %v4142_v52 = vpop.f32.mrf.mxu1 }
 0x206   :  { %v4146_v33 = vpop.f32.mrf.mxu1 }
 0x208   :  { %v4148_v32 = vpop.f32.mrf.mxu1 }
 0x20a   :  { %v4152_v49 = vpop.f32.mrf.mxu1 }
 0x20c   :  { %v4164_v22 = vpop.f32.mrf.mxu1 }
 0x20e   :  { %v4166_v17 = vpop.f32.mrf.mxu1 }
 0x210   :  { %v3004_v56 = vpop.f32.mrf.mxu1 }
 0x211   :  { %v1196_v63 = vadd.f32 %v3004_v56, %v5270_v61  ;;  %v4265_v56 = vadd.f32 %v4164_v22, %v3912_v13 }
 0x212   :  { %v1190_v26 = vpop.f32.mrf.mxu1 }
 0x213   :  { %v1422_v61 = vmul.f32 0.2, %v1196_v63 }
 0x214   :  { %v3007_v12 = vpop.f32.mrf.mxu1 }
 0x216   :  { %v1200_v0 = vpop.f32.mrf.mxu1 }
 0x218   :  { %v4176_v42 = vpop.f32.mrf.mxu1 }
 0x219   :  { %5242 = vst [vmem:[#allocation6_spill] sm:$0xff] %v4176_v42 }
 0x21a   :  { %v4178_v7 = vpop.f32.mrf.mxu1 }
 0x21b   :  { %5243 = vst [vmem:[#allocation5_spill] sm:$0xff] %v4178_v7  ;;  %v4242_v7 = vpop.permute.xlu0 %916 }
 0x21c   :  { %v4182_v5 = vpop.f32.mrf.mxu1  ;;  %5263 = vst [vmem:[#allocation33_spill] sm:$0xff] %v4242_v7 }
 0x21d   :  { %5244 = vst [vmem:[#allocation2_spill] sm:$0xff] %v4182_v5  ;;  %v4244_v5 = vpop.permute.xlu1 %1051 }
 0x21e   :  { %v4186_v25 = vpop.f32.mrf.mxu1  ;;  %5264 = vst [vmem:[#allocation34_spill] sm:$0xff] %v4244_v5  ;;  %v5272_v5 = vld [vmem:[#allocation18_spill] sm:$0xff] }
 0x21f   :  { %5245 = vst [vmem:[#allocation10_spill] sm:$0xff] %v4186_v25 }
 0x220   :  { %v4188_v6 = vpop.f32.mrf.mxu1 }
 0x221   :  { %5246 = vst [vmem:[#allocation8_spill] sm:$0xff] %v4188_v6  ;;  %v4246_v6 = vpop.permute.xlu0 %911  ;;  %v4251_v51 = vpop.permute.xlu1 %1046 }
 0x222   :  { %v4192_v55 = vpop.f32.mrf.mxu1  ;;  %5265 = vst [vmem:[#allocation35_spill] sm:$0xff] %v4246_v6 }
 0x223   :  { %5247 = vst [vmem:[#allocation9_spill] sm:$0xff] %v4192_v55 }
 0x224   :  { %v4196_v50 = vpop.f32.mrf.mxu1 }
 0x225   :  { %5248 = vst [vmem:[#allocation3_spill] sm:$0xff] %v4196_v50  ;;  %v4254_v24 = vpop.permute.xlu0 %906 }
 0x226   :  { %v4198_v60 = vpop.f32.mrf.mxu1 }
 0x227   :  { %5249 = vst [vmem:[#allocation19_spill] sm:$0xff] %v4198_v60  ;;  %v5266_v60 = vld [vmem:[#allocation11_spill] sm:$0xff] }
 0x228   :  { %v4202_v18 = vpop.f32.mrf.mxu1  ;;  %v1206_v50 = vadd.f32 %v3007_v12, %v5266_v60  ;;  %5269 = vst [vmem:[#allocation11_spill] sm:$0xff] %v4251_v51 }
 0x229   :  { %5250 = vst [vmem:[#allocation20_spill] sm:$0xff] %v4202_v18  ;;  %v5267_v18 = vld [vmem:[#allocation13_spill] sm:$0xff] }
 0x22a   :  { %v4206_v38 = vpop.f32.mrf.mxu1  ;;  %v1424_v7 = vmul.f32 0.2, %v1206_v50  ;;  %5271 = vst [vmem:[#allocation13_spill] sm:$0xff] %v4254_v24 }
 0x22b   :  { %5251 = vst [vmem:[#allocation21_spill] sm:$0xff] %v4206_v38 }
 0x22c   :  { %v4208_v27 = vpop.f32.mrf.mxu1  ;;  %v1480_v24 = vmax.f32 %v1206_v50, %v1424_v7  ;;  %v4283_v7 = vpop.permute.xlu0 %901 }
 0x22d   :  { %5252 = vst [vmem:[#allocation22_spill] sm:$0xff] %v4208_v27 }
 0x22e   :  { %v4212_v46 = vpop.f32.mrf.mxu1 }
 0x22f   :  { %5254 = vst [vmem:[#allocation24_spill] sm:$0xff] %v4212_v46  ;;  %v1201_v46 = vadd.f32 %v1200_v0, %v5267_v18 }
 0x230   :  { %v4216_v2 = vpop.f32.mrf.mxu1 }
 0x231   :  { %5256 = vst [vmem:[#allocation26_spill] sm:$0xff] %v4216_v2  ;;  %v5274_v2 = vld [vmem:[#allocation17_spill] sm:$0xff]  ;;  %v1423_v60 = vmul.f32 0.2, %v1201_v46 }
 0x232   :  { %v4218_v15 = vpop.f32.mrf.mxu1  ;;  %v1191_v12 = vadd.f32 %v1190_v26, %v5274_v2 }
 0x233   :  { %5257 = vst [vmem:[#allocation27_spill] sm:$0xff] %v4218_v15 }
 0x234   :  { %v4222_v31 = vpop.f32.mrf.mxu1 }
 0x236   :  { %v4226_v58 = vpop.f32.mrf.mxu1 }
 0x238   :  { %v4228_v16 = vpop.f32.mrf.mxu1 }
 0x23a   :  { %v4232_v4 = vpop.f32.mrf.mxu1 }
 0x23c   :  { %v4236_v37 = vpop.f32.mrf.mxu1 }
 0x23e   :  { %v4238_v8 = vpop.f32.mrf.mxu1 }
 0x240   :  { %v3040_v20 = vpop.f32.mrf.mxu1 }
 0x241   :  { %v4279_v13 = vadd.f32 %v3040_v20, %v4130_v36 }
 0x242   :  { %v1310_v42 = vpop.f32.mrf.mxu1 }
 0x243   :  { %v4294_v20 = vadd.f32 %v1310_v42, %v4140_v10  ;;  %v4308_v10 = vadd.f32 %v4236_v37, %v4150_v48  ;;  %v4324_v48 = vpop.permute.xlu0 %896  ;;  %v4328_v37 = vadd.f32 %v4238_v8, %v4168_v53  ;;  %v4344_v53 = vadd.f32 %v4228_v16, %v4172_v45 }
 0x244   :  { %v3043_v25 = vpop.f32.mrf.mxu1  ;;  %v4360_v45 = vadd.f32 %v4232_v4, %v4180_v44  ;;  %v4380_v4 = vadd.f32 %v4222_v31, %v4190_v23  ;;  %v4396_v23 = vadd.f32 %v4226_v58, %v4200_v9  ;;  %v5277_v9 = vld [vmem:[#allocation23_spill] sm:$0xff]  ;;  %v5278_v58 = vld [vmem:[#allocation26_spill] sm:$0xff] }
 0x245   :  { %v4260_v0 = vadd.f32 %v3043_v25, %v4118_v3  ;;  %v4272_v3 = vpop.permute.xlu1 %1041  ;;  %v4276_v25 = vadd.f32 %v4166_v17, %v4124_v54  ;;  %v1420_v54 = vmul.f32 0.2, %v4265_v56  ;;  %v1478_v17 = vmax.f32 %v1196_v63, %v1422_v61 }
 0x246   :  { %v1320_v55 = vpop.f32.mrf.mxu1  ;;  %v5276_v63 = vmov 0.0   ;;  %v1444_v8 = vmul.f32 0.2, %v4308_v10  ;;  %v1443_v16 = vmul.f32 0.2, %v4328_v37 }
 0x247   :  { %v4376_v44 = vpop.permute.xlu0 %891  ;;  %v1441_v31 = vmul.f32 0.2, %v4360_v45 }
 0x248   :  { %v3046_v38 = vpop.f32.mrf.mxu1 }
 0x249   :  { %v1336_v29 = vadd.f32 %v3046_v38, %v5268_v57  ;;  %v5275_v57 = vld [vmem:[#allocation14_spill] sm:$0xff] }
 0x24a   :  { %v1330_v27 = vpop.f32.mrf.mxu1 }
 0x24b   :  { %v1331_v34 = vadd.f32 %v1330_v27, %v5272_v5  ;;  %v1450_v18 = vmul.f32 0.2, %v1336_v29  ;;  %v4270_v27 = vadd.f32 %v1320_v55, %v4120_v30  ;;  %v1448_v30 = vmul.f32 0.2, %v4260_v0 }
 0x24c   :  { %v3049_v15 = vpop.f32.mrf.mxu1 }
 0x24d   :  { %v1346_v6 = vadd.f32 %v3049_v15, %v5273_v39  ;;  %v1449_v26 = vmul.f32 0.2, %v1331_v34  ;;  %v1479_v15 = vmax.f32 %v1201_v46, %v1423_v60  ;;  %v1506_v55 = vmax.f32 %v1336_v29, %v1450_v18 }
 0x24e   :  { %v1340_v14 = vpop.f32.mrf.mxu1  ;;  %v1447_v36 = vmul.f32 0.2, %v4270_v27  ;;  %v1504_v42 = vmax.f32 %v4260_v0, %v1448_v30  ;;  %v1476_v18 = vmax.f32 %v4265_v56, %v1420_v54  ;;  %v1445_v0 = vmul.f32 0.2, %v4294_v20 }
 0x24f   :  { %v1452_v38 = vmul.f32 0.2, %v1346_v6  ;;  %v1341_v51 = vadd.f32 %v1340_v14, %v5275_v57  ;;  %v1421_v14 = vmul.f32 0.2, %v1191_v12  ;;  %v1505_v60 = vmax.f32 %v1331_v34, %v1449_v26 }
 0x250   :  { %v4267_v5 = vpop.f32.mrf.mxu1  ;;  %v1446_v34 = vmul.f32 0.2, %v4279_v13  ;;  %v1534_v29 = vmax.f32 %v1478_v17, %v1506_v55  ;;  %v4334_v56 = vadd.f32 %v4146_v33, %v4170_v35  ;;  %v1532_v33 = vmax.f32 %v1476_v18, %v1504_v42  ;;  %v5279_v42 = vld [vmem:[#allocation25_spill] sm:$0xff] }
 0x251   :  { %v1508_v39 = vmax.f32 %v1346_v6, %v1452_v38  ;;  %v1451_v2 = vmul.f32 0.2, %v1341_v51  ;;  %v4288_v38 = vadd.f32 %v4148_v32, %v4134_v62  ;;  %v1419_v62 = vmul.f32 0.2, %v4276_v25 }
 0x252   :  { %v4281_v22 = vpop.f32.mrf.mxu1  ;;  %v1477_v32 = vmax.f32 %v1191_v12, %v1421_v14  ;;  %v4350_v35 = vadd.f32 %v4136_v40, %v4174_v28  ;;  %v4368_v30 = vadd.f32 %v4138_v59, %v4184_v41  ;;  %v1415_v55 = vmul.f32 0.2, %v4334_v56 }
 0x253   :  { %v1536_v6 = vmax.f32 %v1480_v24, %v1508_v39  ;;  %v1507_v50 = vmax.f32 %v1341_v51, %v1451_v2  ;;  %v4299_v51 = vadd.f32 %v4152_v49, %v4144_v1  ;;  %v4312_v1 = vpop.permute.xlu1 %1036  ;;  %v4316_v49 = vadd.f32 %v4142_v52, %v4160_v11 }
 0x254   :  { %v4291_v46 = vpop.f32.mrf.mxu1  ;;  %v1418_v12 = vmul.f32 0.2, %v4288_v38  ;;  %v1503_v52 = vmax.f32 %v4270_v27, %v1447_v36  ;;  %v1533_v11 = vmax.f32 %v1477_v32, %v1505_v60  ;;  %v1475_v39 = vmax.f32 %v4276_v25, %v1419_v62 }
 0x255   :  { %v1535_v57 = vmax.f32 %v1479_v15, %v1507_v50  ;;  %2079 = vmatpush1.msra.mxu0 %v1536_v6  ;;  %3103 = vmatpush1.msra.mxu1 %v1536_v6  ;;  %v1417_v26 = vmul.f32 0.2, %v4299_v51  ;;  %v1502_v27 = vmax.f32 %v4279_v13, %v1446_v34  ;;  %v1416_v25 = vmul.f32 0.2, %v4316_v49 }
 0x256   :  { %v4302_v24 = vpop.f32.mrf.mxu1  ;;  %2080 = vmatprep.subr.mxu0 %v5276_v63  ;;  %3076 = vmatprep.subr.mxu1 %v5276_v63  ;;  %v1474_v14 = vmax.f32 %v4288_v38, %v1418_v12  ;;  %v1501_v13 = vmax.f32 %v4294_v20, %v1445_v0  ;;  %v1531_v40 = vmax.f32 %v1475_v39, %v1503_v52  ;;  %v1442_v38 = vmul.f32 0.2, %v4344_v53  ;;  %v4426_v0 = vpop.permute.xlu0 %886  ;;  %v5281_v52 = vld [vmem:[#allocation28_spill] sm:$0xff] }
 0x257   :  { %2081 = vmatpush1.msra.mxu0 %v1535_v57  ;;  %3104 = vmatpush1.msra.mxu1 %v1535_v57  ;;  %v4364_v28 = vpop.permute.xlu1 %1031  ;;  %v1473_v6 = vmax.f32 %v4299_v51, %v1417_v26  ;;  %v1500_v59 = vmax.f32 %v4308_v10, %v1444_v8  ;;  %v4386_v54 = vadd.f32 %v4128_v43, %v4194_v21  ;;  %v1414_v17 = vmul.f32 0.2, %v4350_v35  ;;  %v5283_v8 = vld [vmem:[#allocation29_spill] sm:$0xff] }
 0x258   :  { %v4320_v61 = vpop.f32.mrf.mxu1  ;;  %2082 = vmatprep.subr.mxu0 %v5276_v63  ;;  %3077 = vmatprep.subr.mxu1 %v5276_v63  ;;  %v1530_v41 = vmax.f32 %v1474_v14, %v1502_v27  ;;  %v1472_v20 = vmax.f32 %v4316_v49, %v1416_v25  ;;  %v1499_v60 = vmax.f32 %v4328_v37, %v1443_v16  ;;  %v1413_v57 = vmul.f32 0.2, %v4368_v30  ;;  %v5284_v27 = vld [vmem:[#allocation7_spill] sm:$0xff] }
 0x259   :  { %2083 = vmatpush1.msra.mxu0 %v1534_v29  ;;  %3105 = vmatpush1.msra.mxu1 %v1534_v29  ;;  %v1529_v43 = vmax.f32 %v1473_v6, %v1501_v13  ;;  %v4402_v21 = vadd.f32 %v4132_v47, %v4204_v19  ;;  %v1471_v51 = vmax.f32 %v4334_v56, %v1415_v55  ;;  %v1440_v10 = vmul.f32 0.2, %v4380_v4  ;;  %v5280_v29 = vld [vmem:[#allocation4_spill] sm:$0xff] }
 0x25a   :  { %v4338_v2 = vpop.f32.mrf.mxu1  ;;  %2084 = vmatprep.subr.mxu0 %v5276_v63  ;;  %3078 = vmatprep.subr.mxu1 %v5276_v63  ;;  %v4412_v32 = vadd.f32 %v5278_v58, %v5277_v9  ;;  %v1498_v34 = vmax.f32 %v4344_v53, %v1442_v38  ;;  %v1528_v47 = vmax.f32 %v1472_v20, %v1500_v59  ;;  %v1412_v12 = vmul.f32 0.2, %v4386_v54  ;;  %v5287_v59 = vld [vmem:[#allocation22_spill] sm:$0xff]  ;;  %v5290_v9 = vld [vmem:[#allocation24_spill] sm:$0xff] }
 0x25b   :  { %2085 = vmatpush1.msra.mxu0 %v1533_v11  ;;  %3106 = vmatpush1.msra.mxu1 %v1533_v11  ;;  %v4416_v19 = vpop.permute.xlu1 %1026  ;;  %v4420_v49 = vadd.f32 %v5280_v29, %v5279_v42  ;;  %v1470_v18 = vmax.f32 %v4350_v35, %v1414_v17  ;;  %v5282_v11 = vld [vmem:[#allocation27_spill] sm:$0xff]  ;;  %v1439_v26 = vmul.f32 0.2, %v4396_v23  ;;  %v1497_v39 = vmax.f32 %v4360_v45, %v1441_v31  ;;  %v5288_v31 = vld [vmem:[#allocation32_spill] sm:$0xff] }
 0x25c   :  { %v4354_v15 = vpop.f32.mrf.mxu1  ;;  %2086 = vmatprep.subr.mxu0 %v5276_v63  ;;  %3079 = vmatprep.subr.mxu1 %v5276_v63  ;;  %v4430_v56 = vadd.f32 %v5282_v11, %v5281_v52  ;;  %v1527_v53 = vmax.f32 %v1471_v51, %v1499_v60  ;;  %v1411_v35 = vmul.f32 0.2, %v4402_v21  ;;  %v1469_v25 = vmax.f32 %v4368_v30, %v1413_v57  ;;  %v5286_v30 = vld [vmem:[#allocation31_spill] sm:$0xff]  ;;  %v5289_v51 = vld [vmem:[#allocation33_spill] sm:$0xff] }
 0x25d   :  { %2087 = vmatpush1.msra.mxu0 %v1532_v33  ;;  %3107 = vmatpush1.msra.mxu1 %v1532_v33  ;;  %v4436_v33 = vadd.f32 %v5284_v27, %v5283_v8  ;;  %v1438_v16 = vmul.f32 0.2, %v4412_v32  ;;  %v1496_v45 = vmax.f32 %v4380_v4, %v1440_v10  ;;  %v1526_v13 = vmax.f32 %v1470_v18, %v1498_v34  ;;  %v5293_v18 = vld [vmem:[#allocation20_spill] sm:$0xff]  ;;  %v5294_v11 = vld [vmem:[#allocation11_spill] sm:$0xff]  ;;  %v5296_v8 = vld [vmem:[#allocation21_spill] sm:$0xff] }
 0x25e   :  { %v4372_v50 = vpop.f32.mrf.mxu1  ;;  %2088 = vmatprep.subr.mxu0 %v5276_v63  ;;  %3080 = vmatprep.subr.mxu1 %v5276_v63  ;;  %v1410_v6 = vmul.f32 0.2, %v4420_v49  ;;  %v1468_v38 = vmax.f32 %v4386_v54, %v1412_v12  ;;  %v1437_v4 = vmul.f32 0.2, %v4430_v56  ;;  %v1495_v17 = vmax.f32 %v4396_v23, %v1439_v26  ;;  %v4470_v23 = vpop.permute.xlu0 %881  ;;  %v5292_v12 = vld [vmem:[#allocation35_spill] sm:$0xff] }
 0x25f   :  { %2089 = vmatpush1.msra.mxu0 %v1531_v40  ;;  %3108 = vmatpush1.msra.mxu1 %v1531_v40  ;;  %v5285_v40 = vld [vmem:[#allocation30_spill] sm:$0xff]  ;;  %v1525_v20 = vmax.f32 %v1469_v25, %v1497_v39  ;;  %v1409_v54 = vmul.f32 0.2, %v4436_v33  ;;  %v1467_v57 = vmax.f32 %v4402_v21, %v1411_v35  ;;  %v4466_v58 = vadd.f32 %v5290_v9, %v5289_v51  ;;  %v5300_v51 = vld [vmem:[#allocation9_spill] sm:$0xff] }
 0x260   :  { %v4390_v36 = vpop.f32.mrf.mxu1  ;;  %2090 = vmatprep.subr.mxu0 %v5276_v63  ;;  %3081 = vmatprep.subr.mxu1 %v5276_v63  ;;  %v1494_v10 = vmax.f32 %v4412_v32, %v1438_v16  ;;  %v1524_v34 = vmax.f32 %v1468_v38, %v1496_v45  ;;  %v1466_v21 = vmax.f32 %v4420_v49, %v1410_v6  ;;  %v5297_v16 = vld [vmem:[#allocation3_spill] sm:$0xff] }
 0x261   :  { %2091 = vmatpush1.msra.mxu0 %v1530_v41  ;;  %3109 = vmatpush1.msra.mxu1 %v1530_v41  ;;  %v4451_v41 = vadd.f32 %v5287_v59, %v5286_v30  ;;  %v1493_v32 = vmax.f32 %v4430_v56, %v1437_v4  ;;  %v1465_v49 = vmax.f32 %v4436_v33, %v1409_v54  ;;  %v1435_v35 = vmul.f32 0.2, %v4466_v58 }
 0x262   :  { %v4406_v62 = vpop.f32.mrf.mxu1  ;;  %2092 = vmatprep.subr.mxu0 %v5276_v63  ;;  %3082 = vmatprep.subr.mxu1 %v5276_v63  ;;  %v1522_v56 = vmax.f32 %v1466_v21, %v1494_v10  ;;  %v4508_v45 = vadd.f32 %v5297_v16, %v4283_v7  ;;  %v5298_v7 = vld [vmem:[#allocation19_spill] sm:$0xff]  ;;  %v4550_v9 = vadd.f32 %v5300_v51, %v4426_v0  ;;  %v5301_v0 = vld [vmem:[#allocation2_spill] sm:$0xff] }
 0x263   :  { %2093 = vmatpush1.msra.mxu0 %v1529_v43  ;;  %3110 = vmatpush1.msra.mxu1 %v1529_v43  ;;  %v4460_v43 = vpop.permute.xlu1 %1021  ;;  %v1436_v52 = vmul.f32 0.2, %v4451_v41  ;;  %v4489_v26 = vadd.f32 %v4406_v62, %v5294_v11  ;;  %v4502_v62 = vadd.f32 %v4354_v15, %v4272_v3  ;;  %v877_v3 = vpop.permute.xlu0 %876  ;;  %v1521_v15 = vmax.f32 %v1465_v49, %v1493_v32  ;;  %v1554_v51 = vld [vmem:[%s5208_s5 + $0x28] sm:$0xff] }
 0x264   :  { %v3067_v37 = vpop.f32.mrf.mxu1  ;;  %2094 = vmatprep.subr.mxu0 %v5276_v63  ;;  %3083 = vmatprep.subr.mxu1 %v5276_v63  ;;  %v4522_v30 = vadd.f32 %v5298_v7, %v4324_v48  ;;  %v5299_v48 = vld [vmem:[#allocation8_spill] sm:$0xff] }
 0x265   :  { %2095 = vmatpush1.msra.mxu0 %v1528_v47  ;;  %3111 = vmatpush1.msra.mxu1 %v1528_v47  ;;  %v4445_v55 = vadd.f32 %v3067_v37, %v5285_v40  ;;  %v5291_v47 = vld [vmem:[#allocation34_spill] sm:$0xff]  ;;  %v4481_v37 = vadd.f32 %v5293_v18, %v5292_v12  ;;  %v1492_v40 = vmax.f32 %v4451_v41, %v1436_v52  ;;  %v1461_v6 = vmul.f32 0.2, %v4489_v26 }
 0x266   :  { %v1400_v14 = vpop.f32.mrf.mxu1  ;;  %2096 = vmatprep.subr.mxu0 %v5276_v63  ;;  %3084 = vmatprep.subr.mxu1 %v5276_v63  ;;  %v4475_v42 = vadd.f32 %v4390_v36, %v5291_v47  ;;  %v1523_v36 = vmax.f32 %v1467_v57, %v1495_v17  ;;  %v1491_v41 = vmax.f32 %v4466_v58, %v1435_v35  ;;  %v1431_v58 = vmul.f32 0.2, %v4522_v30  ;;  %v5302_v52 = vld [vmem:[#allocation10_spill] sm:$0xff] }
 0x267   :  { %2097 = vmatpush1.msra.mxu0 %v1527_v53  ;;  %3112 = vmatpush1.msra.mxu1 %v1527_v53  ;;  %v4458_v60 = vadd.f32 %v1400_v14, %v5288_v31  ;;  %v1464_v29 = vmul.f32 0.2, %v4445_v55  ;;  %v5295_v53 = vld [vmem:[#allocation13_spill] sm:$0xff]  ;;  %v1017_v33 = vpop.permute.xlu1 %1016  ;;  %v1432_v31 = vmul.f32 0.2, %v4508_v45  ;;  %v1517_v54 = vmax.f32 %v4489_v26, %v1461_v6 }
 0x268   :  { %2098 = vmatprep.subr.mxu0 %v5276_v63  ;;  %3085 = vmatprep.subr.mxu1 %v5276_v63  ;;  %v4495_v27 = vadd.f32 %v5296_v8, %v5295_v53  ;;  %v1462_v25 = vmul.f32 0.2, %v4475_v42  ;;  %v1221_v32 = vadd.f32 %v5302_v52, %v877_v3  ;;  %v5303_v53 = vld [vmem:[#allocation6_spill] sm:$0xff]  ;;  %v1630_v52 = vld [vmem:[%s5208_s5 + $0x288] sm:$0xff] }
 0x269   :  { %2099 = vmatpush1.msra.mxu0 %v1526_v13  ;;  %3113 = vmatpush1.msra.mxu1 %v1526_v13  ;;  %v1463_v39 = vmul.f32 0.2, %v4458_v60  ;;  %v1520_v14 = vmax.f32 %v4445_v55, %v1464_v29  ;;  %v1434_v13 = vmul.f32 0.2, %v4481_v37  ;;  %v4516_v55 = vadd.f32 %v4372_v50, %v4312_v1 }
 0x26a   :  { %2100 = vmatprep.subr.mxu0 %v5276_v63  ;;  %3086 = vmatprep.subr.mxu1 %v5276_v63  ;;  %v1433_v59 = vmul.f32 0.2, %v4495_v27  ;;  %v4530_v1 = vadd.f32 %v4320_v61, %v4364_v28  ;;  %v1460_v50 = vmul.f32 0.2, %v4502_v62  ;;  %v1518_v4 = vmax.f32 %v4475_v42, %v1462_v25 }
 0x26b   :  { %2101 = vmatpush1.msra.mxu0 %v1525_v20  ;;  %3114 = vmatpush1.msra.mxu1 %v1525_v20  ;;  %v1519_v38 = vmax.f32 %v4458_v60, %v1463_v39  ;;  %v1548_v17 = vmax.f32 %v1492_v40, %v1520_v14  ;;  %v4536_v20 = vadd.f32 %v5299_v48, %v4376_v44  ;;  %v1459_v28 = vmul.f32 0.2, %v4516_v55  ;;  %v1012_v44 = vpop.permute.xlu1 %1011 }
 0x26c   :  { %2102 = vmatprep.subr.mxu0 %v5276_v63  ;;  %3087 = vmatprep.subr.mxu1 %v5276_v63  ;;  %v1490_v60 = vmax.f32 %v4481_v37, %v1434_v13  ;;  %v4544_v61 = vadd.f32 %v4338_v2, %v4416_v19  ;;  %v1489_v10 = vmax.f32 %v4495_v27, %v1433_v59  ;;  %v872_v2 = vpop.permute.xlu0 %871 }
 0x26d   :  { %2103 = vmatpush1.msra.mxu0 %v1524_v34  ;;  %3115 = vmatpush1.msra.mxu1 %v1524_v34  ;;  %v1547_v57 = vmax.f32 %v1491_v41, %v1519_v38  ;;  %v4558_v19 = vadd.f32 %v4291_v46, %v4460_v43  ;;  %v1458_v34 = vmul.f32 0.2, %v4530_v1  ;;  %v1516_v47 = vmax.f32 %v4502_v62, %v1460_v50 }
 0x26e   :  { %2104 = vmatprep.subr.mxu0 %v5276_v63  ;;  %3088 = vmatprep.subr.mxu1 %v5276_v63  ;;  %v1546_v42 = vmax.f32 %v1490_v60, %v1518_v4  ;;  %v1226_v29 = vadd.f32 %v5301_v0, %v4470_v23  ;;  %v1430_v21 = vmul.f32 0.2, %v4536_v20  ;;  %v1488_v12 = vmax.f32 %v4508_v45, %v1432_v31  ;;  %v1549_v60 = vld [vmem:[%s5208_s5] sm:$0xff]  ;;  %v1626_v0 = vld [vmem:[%s5208_s5 + $0x268] sm:$0xff] }
 0x26f   :  { %2105 = vmatpush1.msra.mxu0 %v1523_v36  ;;  %3116 = vmatpush1.msra.mxu1 %v1523_v36  ;;  %v1361_v46 = vadd.f32 %v4302_v24, %v1017_v33  ;;  %v1457_v43 = vmul.f32 0.2, %v4544_v61  ;;  %v1515_v18 = vmax.f32 %v4516_v55, %v1459_v28  ;;  %v1545_v37 = vmax.f32 %v1489_v10, %v1517_v54  ;;  %v1007_v49 = vpop.permute.xlu1 %1006  ;;  %v5304_v33 = vld [vmem:[#allocation5_spill] sm:$0xff]  ;;  %v1621_v10 = vld [vmem:[%s5208_s5 + $0x240] sm:$0xff] }
 0x270   :  { %2106 = vmatprep.subr.mxu0 %v5276_v63  ;;  %3089 = vmatprep.subr.mxu1 %v5276_v63  ;;  %v1429_v23 = vmul.f32 0.2, %v4550_v9  ;;  %v1487_v36 = vmax.f32 %v4522_v30, %v1431_v58  ;;  %v1356_v11 = vadd.f32 %v4267_v5, %v1012_v44  ;;  %v1456_v24 = vmul.f32 0.2, %v4558_v19  ;;  %v1552_v28 = vld [vmem:[%s5208_s5 + $0x18] sm:$0xff]  ;;  %v1619_v44 = vld [vmem:[%s5208_s5 + $0x230] sm:$0xff] }
 0x271   :  { %2107 = vmatpush1.msra.mxu0 %v1522_v56  ;;  %3117 = vmatpush1.msra.mxu1 %v1522_v56  ;;  %v1514_v26 = vmax.f32 %v4530_v1, %v1458_v34  ;;  %v1544_v39 = vmax.f32 %v1488_v12, %v1516_v47  ;;  %v1216_v8 = vadd.f32 %v5303_v53, %v872_v2  ;;  %v1428_v27 = vmul.f32 0.2, %v1226_v29  ;;  %v867_v56 = vpop.permute.xlu0 %866  ;;  %v1620_v54 = vld [vmem:[%s5208_s5 + $0x238] sm:$0xff]  ;;  %v1553_v58 = vld [vmem:[%s5208_s5 + $0x20] sm:$0xff]  ;;  %v1555_v34 = vld [vmem:[%s5208_s5 + $0x30] sm:$0xff] }
 0x272   :  { %2108 = vmatprep.subr.mxu0 %v5276_v63  ;;  %3090 = vmatprep.subr.mxu1 %v5276_v63  ;;  %v1486_v35 = vmax.f32 %v4536_v20, %v1430_v21  ;;  %v1351_v5 = vadd.f32 %v4281_v22, %v1007_v49  ;;  %v1455_v62 = vmul.f32 0.2, %v1361_v46  ;;  %v1513_v25 = vmax.f32 %v4544_v61, %v1457_v43  ;;  %v1617_v61 = vld [vmem:[%s5208_s5 + $0x220] sm:$0xff]  ;;  %v1556_v2 = vld [vmem:[%s5208_s5 + $0x38] sm:$0xff]  ;;  %v1623_v47 = vld [vmem:[%s5208_s5 + $0x250] sm:$0xff] }
 0x273   :  { %2109 = vmatpush1.msra.mxu0 %v1521_v15  ;;  %3118 = vmatpush1.msra.mxu1 %v1521_v15  ;;  %v1543_v14 = vmax.f32 %v1487_v36, %v1515_v18  ;;  %v1211_v16 = vadd.f32 %v5304_v33, %v867_v56  ;;  %v1427_v45 = vmul.f32 0.2, %v1221_v32  ;;  %v1485_v13 = vmax.f32 %v4550_v9, %v1429_v23  ;;  %v1622_v9 = vld [vmem:[%s5208_s5 + $0x248] sm:$0xff]  ;;  %v1625_v21 = vld [vmem:[%s5208_s5 + $0x260] sm:$0xff]  ;;  %v1560_v12 = vld [vmem:[%s5208_s5 + $0x58] sm:$0xff] }
 0x274   :  { %2118 = vmatprep.subr.mxu0 %v5276_v63  ;;  %3091 = vmatprep.subr.mxu1 %v5276_v63  ;;  %v1454_v40 = vmul.f32 0.2, %v1356_v11  ;;  %v1512_v3 = vmax.f32 %v4558_v19, %v1456_v24  ;;  %v1542_v15 = vmax.f32 %v1486_v35, %v1514_v26  ;;  %v1426_v22 = vmul.f32 0.2, %v1216_v8  ;;  %v1624_v19 = vld [vmem:[%s5208_s5 + $0x258] sm:$0xff]  ;;  %v1559_v43 = vld [vmem:[%s5208_s5 + $0x50] sm:$0xff] }
 0x275   :  { %2119 = vmatpush2.msra.mxu0 %v1548_v17  ;;  %3119 = vmatpush2.msra.mxu1 %v1548_v17  ;;  %v1484_v55 = vmax.f32 %v1226_v29, %v1428_v27  ;;  %v1453_v6 = vmul.f32 0.2, %v1351_v5  ;;  %v1511_v38 = vmax.f32 %v1361_v46, %v1455_v62  ;;  %v1541_v7 = vmax.f32 %v1485_v13, %v1513_v25  ;;  %v1557_v29 = vld [vmem:[%s5208_s5 + $0x40] sm:$0xff]  ;;  %v1628_v46 = vld [vmem:[%s5208_s5 + $0x278] sm:$0xff]  ;;  %v1627_v18 = vld [vmem:[%s5208_s5 + $0x270] sm:$0xff] }
 0x276   :  { %2120 = vmatprep.subr.mxu0 %v5276_v63  ;;  %3092 = vmatprep.subr.mxu1 %v5276_v63  ;;  %v1425_v30 = vmul.f32 0.2, %v1211_v16  ;;  %v1483_v59 = vmax.f32 %v1221_v32, %v1427_v45  ;;  %v1510_v41 = vmax.f32 %v1356_v11, %v1454_v40  ;;  %v1482_v50 = vmax.f32 %v1216_v8, %v1426_v22  ;;  %v1561_v32 = vld [vmem:[%s5208_s5 + $0x60] sm:$0xff]  ;;  %v1564_v36 = vld [vmem:[%s5208_s5 + $0x78] sm:$0xff]  ;;  %v1563_v24 = vld [vmem:[%s5208_s5 + $0x70] sm:$0xff] }
 0x277   :  { %2121 = vmatpush2.msra.mxu0 %v1547_v57  ;;  %3120 = vmatpush2.msra.mxu1 %v1547_v57  ;;  %v1540_v1 = vmax.f32 %v1484_v55, %v1512_v3  ;;  %v1509_v4 = vmax.f32 %v1351_v5, %v1453_v6  ;;  %v1551_v57 = vld [vmem:[%s5208_s5 + $0x10] sm:$0xff]  ;;  %v1629_v23 = vld [vmem:[%s5208_s5 + $0x280] sm:$0xff]  ;;  %v1632_v11 = vld [vmem:[%s5208_s5 + $0x298] sm:$0xff] }
 0x278   :  { %2122 = vmatprep.subr.mxu0 %v5276_v63  ;;  %3093 = vmatprep.subr.mxu1 %v5276_v63  ;;  %v1539_v17 = vmax.f32 %v1483_v59, %v1511_v38  ;;  %v1481_v48 = vmax.f32 %v1211_v16, %v1425_v30  ;;  %v1538_v20 = vmax.f32 %v1482_v50, %v1510_v41  ;;  %v1631_v26 = vld [vmem:[%s5208_s5 + $0x290] sm:$0xff]  ;;  %v1634_v49 = vld [vmem:[%s5208_s5 + $0x2a8] sm:$0xff]  ;;  %v1565_v53 = vld [vmem:[%s5208_s5 + $0x80] sm:$0xff] }
 0x279   :  { %2123 = vmatpush2.msra.mxu0 %v1546_v42  ;;  %3121 = vmatpush2.msra.mxu1 %v1546_v42  ;;  %v1558_v42 = vld [vmem:[%s5208_s5 + $0x48] sm:$0xff]  ;;  %v1633_v8 = vld [vmem:[%s5208_s5 + $0x2a0] sm:$0xff]  ;;  %v1568_v27 = vld [vmem:[%s5208_s5 + $0x98] sm:$0xff] }
 0x27a   :  { %2124 = vmatprep.subr.mxu0 %v5276_v63  ;;  %3094 = vmatprep.subr.mxu1 %v5276_v63  ;;  %v1537_v31 = vmax.f32 %v1481_v48, %v1509_v4  ;;  %v1636_v35 = vld [vmem:[%s5208_s5 + $0x2b8] sm:$0xff]  ;;  %v1567_v56 = vld [vmem:[%s5208_s5 + $0x90] sm:$0xff]  ;;  %v1570_v62 = vld [vmem:[%s5208_s5 + $0xa8] sm:$0xff] }
 0x27b   :  { %2125 = vmatpush2.msra.mxu0 %v1545_v37  ;;  %3122 = vmatpush2.msra.mxu1 %v1545_v37  ;;  %v1562_v37 = vld [vmem:[%s5208_s5 + $0x68] sm:$0xff]  ;;  %v1635_v5 = vld [vmem:[%s5208_s5 + $0x2b0] sm:$0xff]  ;;  %v1637_v33 = vld [vmem:[%s5208_s5 + $0x2c0] sm:$0xff] }
 0x27c   :  { %2126 = vmatprep.subr.mxu0 %v5276_v63  ;;  %3095 = vmatprep.subr.mxu1 %v5276_v63  ;;  %v1638_v25 = vld [vmem:[%s5208_s5 + $0x2c8] sm:$0xff]  ;;  %v1572_v16 = vld [vmem:[%s5208_s5 + $0xb8] sm:$0xff]  ;;  %v1571_v13 = vld [vmem:[%s5208_s5 + $0xb0] sm:$0xff] }
 0x27d   :  { %2127 = vmatpush2.msra.mxu0 %v1544_v39  ;;  %3123 = vmatpush2.msra.mxu1 %v1544_v39  ;;  %v1566_v39 = vld [vmem:[%s5208_s5 + $0x88] sm:$0xff]  ;;  %v1640_v45 = vld [vmem:[%s5208_s5 + $0x2d8] sm:$0xff]  ;;  %v1639_v40 = vld [vmem:[%s5208_s5 + $0x2d0] sm:$0xff] }
 0x27e   :  { %2128 = vmatprep.subr.mxu0 %v5276_v63  ;;  %3096 = vmatprep.subr.mxu1 %v5276_v63  ;;  %v1574_v3 = vld [vmem:[%s5208_s5 + $0xc8] sm:$0xff]  ;;  %v1573_v22 = vld [vmem:[%s5208_s5 + $0xc0] sm:$0xff]  ;;  %v1576_v6 = vld [vmem:[%s5208_s5 + $0xd8] sm:$0xff] }
 0x27f   :  { %2129 = vmatpush2.msra.mxu0 %v1543_v14  ;;  %3124 = vmatpush2.msra.mxu1 %v1543_v14  ;;  %v1569_v14 = vld [vmem:[%s5208_s5 + $0xa0] sm:$0xff]  ;;  %v1644_v38 = vld [vmem:[%s5208_s5 + $0x2f8] sm:$0xff]  ;;  %v1643_v30 = vld [vmem:[%s5208_s5 + $0x2f0] sm:$0xff] }
 0x280   :  { %2130 = vmatprep.subr.mxu0 %v5276_v63  ;;  %3097 = vmatprep.subr.mxu1 %v5276_v63  ;;  %v1641_v55 = vld [vmem:[%s5208_s5 + $0x2e0] sm:$0xff]  ;;  %v1578_v59 = vld [vmem:[%s5208_s5 + $0xe8] sm:$0xff]  ;;  %v1579_v50 = vld [vmem:[%s5208_s5 + $0xf0] sm:$0xff] }
 0x281   :  { %2131 = vmatpush2.msra.mxu0 %v1542_v15  ;;  %3125 = vmatpush2.msra.mxu1 %v1542_v15  ;;  %v1642_v15 = vld [vmem:[%s5208_s5 + $0x2e8] sm:$0xff]  ;;  %v1577_v41 = vld [vmem:[%s5208_s5 + $0xe0] sm:$0xff]  ;;  %v1584_v48 = vld [vmem:[%s5208_s5 + $0x118] sm:$0xff] }
 0x282   :  { %2132 = vmatprep.subr.mxu0 %v5276_v63  ;;  %3098 = vmatprep.subr.mxu1 %v5276_v63  ;;  %v1582_v4 = vld [vmem:[%s5208_s5 + $0x108] sm:$0xff] }
 0x283   :  { %2133 = vmatpush2.msra.mxu0 %v1541_v7  ;;  %3126 = vmatpush2.msra.mxu1 %v1541_v7  ;;  %v1575_v7 = vld [vmem:[%s5208_s5 + $0xd0] sm:$0xff] }
 0x284   :  { %2134 = vmatprep.subr.mxu0 %v5276_v63  ;;  %3099 = vmatprep.subr.mxu1 %v5276_v63 }
 0x285   :  { %2135 = vmatpush2.msra.mxu0 %v1540_v1  ;;  %3127 = vmatpush2.msra.mxu1 %v1540_v1  ;;  %v1580_v1 = vld [vmem:[%s5208_s5 + $0xf8] sm:$0xff] }
 0x286   :  { %2136 = vmatprep.subr.mxu0 %v5276_v63  ;;  %3100 = vmatprep.subr.mxu1 %v5276_v63 }
 0x287   :  { %2137 = vmatpush2.msra.mxu0 %v1539_v17  ;;  %3128 = vmatpush2.msra.mxu1 %v1539_v17  ;;  %v1581_v17 = vld [vmem:[%s5208_s5 + $0x100] sm:$0xff] }
 0x288   :  { %2138 = vmatprep.subr.mxu0 %v5276_v63  ;;  %3101 = vmatprep.subr.mxu1 %v5276_v63 }
 0x289   :  { %2139 = vmatpush2.msra.mxu0 %v1538_v20  ;;  %3129 = vmatpush2.msra.mxu1 %v1538_v20  ;;  %v1583_v20 = vld [vmem:[%s5208_s5 + $0x110] sm:$0xff] }
 0x28a   :  { %2140 = vmatprep.subr.mxu0 %v5276_v63  ;;  %3102 = vmatprep.subr.mxu1 %v5276_v63 }
 0x28b   :  { %2141 = vmatpush2.msra.mxu0 %v1537_v31  ;;  %3130 = vmatpush2.msra.mxu1 %v1537_v31  ;;  %v1586_v31 = vld [vmem:[%s5208_s5 + $0x128] sm:$0xff] }
 0x28c   :  { %2143 = vmatmul.mubr.f32.vlgmr.msra.gmra.mxu0 %v1549_v60  ;;  %2313 = vmatmul.mubr.f32.vlgmr.msra.gmra.mxu1 %v1617_v61  ;;  %v1585_v60 = vld [vmem:[%s5208_s5 + $0x120] sm:$0xff]  ;;  %v1588_v61 = vld [vmem:[%s5208_s5 + $0x138] sm:$0xff] }
 0x28d   :  { %2723 = vmatprep.mubr.msk.f32.mxu0 %vm1933_vm1, %v1552_v28  ;;  %2757 = vmatprep.mubr.msk.f32.mxu1 %vm1933_vm1, %v1620_v54  ;;  %v1587_v28 = vld [vmem:[%s5208_s5 + $0x130] sm:$0xff]  ;;  %v1590_v54 = vld [vmem:[%s5208_s5 + $0x148] sm:$0xff] }
 0x28e   :  { %2525 = vmatprep.subr.mxu1 %v5276_v63 }
 0x290   :  { %2148 = vmatmul.mubr.f32.gmra.mxu0 %v1551_v57  ;;  %2318 = vmatmul.mubr.f32.gmra.mxu1 %v1619_v44  ;;  %v1589_v57 = vld [vmem:[%s5208_s5 + $0x140] sm:$0xff]  ;;  %v1592_v44 = vld [vmem:[%s5208_s5 + $0x158] sm:$0xff] }
 0x291   :  { %2724 = vmatprep.mubr.msk.f32.mxu0 %vm1933_vm1, %v1554_v51  ;;  %2758 = vmatprep.mubr.msk.f32.mxu1 %vm1933_vm1, %v1622_v9  ;;  %v1591_v51 = vld [vmem:[%s5208_s5 + $0x150] sm:$0xff]  ;;  %v1594_v9 = vld [vmem:[%s5208_s5 + $0x168] sm:$0xff] }
 0x294   :  { %2153 = vmatmul.mubr.f32.gmra.mxu0 %v1553_v58  ;;  %2323 = vmatmul.mubr.f32.gmra.mxu1 %v1621_v10  ;;  %v1593_v58 = vld [vmem:[%s5208_s5 + $0x160] sm:$0xff]  ;;  %v1596_v10 = vld [vmem:[%s5208_s5 + $0x178] sm:$0xff] }
 0x295   :  { %2725 = vmatprep.mubr.msk.f32.mxu0 %vm1933_vm1, %v1556_v2  ;;  %2759 = vmatprep.mubr.msk.f32.mxu1 %vm1933_vm1, %v1624_v19  ;;  %v1595_v2 = vld [vmem:[%s5208_s5 + $0x170] sm:$0xff]  ;;  %v1598_v19 = vld [vmem:[%s5208_s5 + $0x188] sm:$0xff] }
 0x298   :  { %2158 = vmatmul.mubr.f32.gmra.mxu0 %v1555_v34  ;;  %2328 = vmatmul.mubr.f32.gmra.mxu1 %v1623_v47  ;;  %v1597_v34 = vld [vmem:[%s5208_s5 + $0x180] sm:$0xff]  ;;  %v1600_v47 = vld [vmem:[%s5208_s5 + $0x198] sm:$0xff] }
 0x299   :  { %2726 = vmatprep.mubr.msk.f32.mxu0 %vm1933_vm1, %v1558_v42  ;;  %2760 = vmatprep.mubr.msk.f32.mxu1 %vm1933_vm1, %v1626_v0  ;;  %v1599_v42 = vld [vmem:[%s5208_s5 + $0x190] sm:$0xff]  ;;  %v1602_v0 = vld [vmem:[%s5208_s5 + $0x1a8] sm:$0xff] }
 0x29c   :  { %2163 = vmatmul.mubr.f32.gmra.mxu0 %v1557_v29  ;;  %2333 = vmatmul.mubr.f32.gmra.mxu1 %v1625_v21  ;;  %v1601_v29 = vld [vmem:[%s5208_s5 + $0x1a0] sm:$0xff]  ;;  %v1604_v21 = vld [vmem:[%s5208_s5 + $0x1b8] sm:$0xff] }
 0x29d   :  { %2727 = vmatprep.mubr.msk.f32.mxu0 %vm1933_vm1, %v1560_v12  ;;  %2761 = vmatprep.mubr.msk.f32.mxu1 %vm1933_vm1, %v1628_v46  ;;  %v1603_v12 = vld [vmem:[%s5208_s5 + $0x1b0] sm:$0xff]  ;;  %v1606_v46 = vld [vmem:[%s5208_s5 + $0x1c8] sm:$0xff] }
 0x2a0   :  { %2168 = vmatmul.mubr.f32.gmra.mxu0 %v1559_v43  ;;  %2338 = vmatmul.mubr.f32.gmra.mxu1 %v1627_v18  ;;  %v1605_v43 = vld [vmem:[%s5208_s5 + $0x1c0] sm:$0xff]  ;;  %v1608_v18 = vld [vmem:[%s5208_s5 + $0x1d8] sm:$0xff] }
 0x2a1   :  { %2728 = vmatprep.mubr.msk.f32.mxu0 %vm1933_vm1, %v1562_v37  ;;  %2762 = vmatprep.mubr.msk.f32.mxu1 %vm1933_vm1, %v1630_v52  ;;  %v4899_v37 = vpop.permute.xlu1 %1890  ;;  %v1607_v52 = vld [vmem:[%s5208_s5 + $0x1d0] sm:$0xff] }
 0x2a4   :  { %2173 = vmatmul.mubr.f32.gmra.mxu0 %v1561_v32  ;;  %2343 = vmatmul.mubr.f32.gmra.mxu1 %v1629_v23  ;;  %v1610_v32 = vld [vmem:[%s5208_s5 + $0x1e8] sm:$0xff]  ;;  %v4908_v23 = vpop.permute.xlu0 %1770 }
 0x2a5   :  { %2729 = vmatprep.mubr.msk.f32.mxu0 %vm1933_vm1, %v1564_v36  ;;  %2763 = vmatprep.mubr.msk.f32.mxu1 %vm1933_vm1, %v1632_v11  ;;  %v1609_v36 = vld [vmem:[%s5208_s5 + $0x1e0] sm:$0xff]  ;;  %v1612_v11 = vld [vmem:[%s5208_s5 + $0x1f8] sm:$0xff] }
 0x2a8   :  { %2178 = vmatmul.mubr.f32.gmra.mxu0 %v1563_v24  ;;  %2348 = vmatmul.mubr.f32.gmra.mxu1 %v1631_v26  ;;  %v4917_v24 = vpop.permute.xlu1 %1885  ;;  %v1611_v26 = vld [vmem:[%s5208_s5 + $0x1f0] sm:$0xff] }
 0x2a9   :  { %2730 = vmatprep.mubr.msk.f32.mxu0 %vm1933_vm1, %v1566_v39  ;;  %2764 = vmatprep.mubr.msk.f32.mxu1 %vm1933_vm1, %v1634_v49  ;;  %v1614_v39 = vld [vmem:[%s5208_s5 + $0x208] sm:$0xff]  ;;  %v4926_v49 = vpop.permute.xlu0 %1765 }
 0x2ac   :  { %2183 = vmatmul.mubr.f32.gmra.mxu0 %v1565_v53  ;;  %2353 = vmatmul.mubr.f32.gmra.mxu1 %v1633_v8  ;;  %v4928_v53 = vpop.permute.xlu1 %1880  ;;  %v1613_v8 = vld [vmem:[%s5208_s5 + $0x200] sm:$0xff] }
 0x2ad   :  { %2731 = vmatprep.mubr.msk.f32.mxu0 %vm1933_vm1, %v1568_v27  ;;  %2765 = vmatprep.mubr.msk.f32.mxu1 %vm1933_vm1, %v1636_v35  ;;  %v1616_v27 = vld [vmem:[%s5208_s5 + $0x218] sm:$0xff]  ;;  %v4937_v35 = vpop.permute.xlu0 %1760 }
 0x2b0   :  { %2188 = vmatmul.mubr.f32.gmra.mxu0 %v1567_v56  ;;  %2358 = vmatmul.mubr.f32.gmra.mxu1 %v1635_v5  ;;  %v1615_v56 = vld [vmem:[%s5208_s5 + $0x210] sm:$0xff]  ;;  %v4943_v5 = vpop.permute.xlu1 %1875 }
 0x2b1   :  { %2732 = vmatprep.mubr.msk.f32.mxu0 %vm1933_vm1, %v1570_v62  ;;  %2766 = vmatprep.mubr.msk.f32.mxu1 %vm1933_vm1, %v1638_v25  ;;  %v4945_v62 = vpop.permute.xlu0 %1755 }
 0x2b4   :  { %2193 = vmatmul.mubr.f32.gmra.mxu0 %v1569_v14  ;;  %2363 = vmatmul.mubr.f32.gmra.mxu1 %v1637_v33  ;;  %v4947_v25 = vpop.permute.xlu1 %1870 }
 0x2b5   :  { %2733 = vmatprep.mubr.msk.f32.mxu0 %vm1933_vm1, %v1572_v16  ;;  %2767 = vmatprep.mubr.msk.f32.mxu1 %vm1933_vm1, %v1640_v45  ;;  %v4949_v14 = vpop.permute.xlu0 %1750 }
 0x2b8   :  { %2198 = vmatmul.mubr.f32.gmra.mxu0 %v1571_v13  ;;  %2368 = vmatmul.mubr.f32.gmra.mxu1 %v1639_v40  ;;  %v4951_v33 = vpop.permute.xlu1 %1865 }
 0x2b9   :  { %2734 = vmatprep.mubr.msk.f32.mxu0 %vm1933_vm1, %v1574_v3  ;;  %2768 = vmatprep.mubr.msk.f32.mxu1 %vm1933_vm1, %v1642_v15  ;;  %v4953_v16 = vpop.permute.xlu0 %1745 }
 0x2bc   :  { %2203 = vmatmul.mubr.f32.gmra.mxu0 %v1573_v22  ;;  %2373 = vmatmul.mubr.f32.gmra.mxu1 %v1641_v55  ;;  %v4955_v45 = vpop.permute.xlu1 %1860 }
 0x2bd   :  { %2735 = vmatprep.mubr.msk.f32.mxu0 %vm1933_vm1, %v1576_v6  ;;  %2769 = vmatprep.mubr.msk.f32.mxu1 %vm1933_vm1, %v1644_v38  ;;  %5305 = vst [vmem:[#allocation16_spill] sm:$0xff] %v4955_v45  ;;  %v4957_v13 = vpop.permute.xlu0 %1740 }
 0x2c0   :  { %2208 = vmatmul.mubr.f32.gmra.mxu0 %v1575_v7  ;;  %2378 = vmatmul.mubr.f32.gmra.mxu1 %v1643_v30  ;;  %v4959_v40 = vpop.permute.xlu1 %1855 }
 0x2c1   :  { %2736 = vmatprep.mubr.msk.f32.mxu0 %vm1933_vm1, %v1578_v59  ;;  %v4961_v3 = vpop.permute.xlu0 %1735 }
 0x2c4   :  { %2213 = vmatmul.mubr.f32.gmra.mxu0 %v1577_v41  ;;  %v4963_v15 = vpop.permute.xlu1 %1850 }
 0x2c5   :  { %2737 = vmatprep.mubr.msk.f32.mxu0 %vm1933_vm1, %v1580_v1  ;;  %5306 = vst [vmem:[#allocation15_spill] sm:$0xff] %v4963_v15  ;;  %v4965_v22 = vpop.permute.xlu0 %1730 }
 0x2c6   :  { %5307 = vst [vmem:[#allocation18_spill] sm:$0xff] %v4965_v22 }
 0x2c8   :  { %2218 = vmatmul.mubr.f32.gmra.mxu0 %v1579_v50  ;;  %v4967_v55 = vpop.permute.xlu1 %1845 }
 0x2c9   :  { %2738 = vmatprep.mubr.msk.f32.mxu0 %vm1933_vm1, %v1582_v4  ;;  %5308 = vst [vmem:[#allocation12_spill] sm:$0xff] %v4967_v55  ;;  %v4969_v6 = vpop.permute.xlu0 %1725 }
 0x2ca   :  { %5309 = vst [vmem:[#allocation17_spill] sm:$0xff] %v4969_v6 }
 0x2cc   :  { %2223 = vmatmul.mubr.f32.gmra.mxu0 %v1581_v17  ;;  %v4971_v38 = vpop.permute.xlu1 %1840 }
 0x2cd   :  { %2739 = vmatprep.mubr.msk.f32.mxu0 %vm1933_vm1, %v1584_v48  ;;  %5310 = vst [vmem:[#allocation14_spill] sm:$0xff] %v4971_v38  ;;  %v4973_v7 = vpop.permute.xlu0 %1720 }
 0x2ce   :  { %5311 = vst [vmem:[#allocation23_spill] sm:$0xff] %v4973_v7 }
 0x2d0   :  { %2228 = vmatmul.mubr.f32.gmra.mxu0 %v1583_v20  ;;  %v4975_v30 = vpop.permute.xlu1 %1835 }
 0x2d1   :  { %2740 = vmatprep.mubr.msk.f32.mxu0 %vm1933_vm1, %v1586_v31  ;;  %5312 = vst [vmem:[#allocation26_spill] sm:$0xff] %v4975_v30  ;;  %v4977_v59 = vpop.permute.xlu0 %1715 }
 0x2d2   :  { %5313 = vst [vmem:[#allocation25_spill] sm:$0xff] %v4977_v59 }
 0x2d4   :  { %2233 = vmatmul.mubr.f32.gmra.mxu0 %v1585_v60  ;;  %v4979_v41 = vpop.permute.xlu1 %1830 }
 0x2d5   :  { %2741 = vmatprep.mubr.msk.f32.mxu0 %vm1933_vm1, %v1588_v61  ;;  %5314 = vst [vmem:[#allocation4_spill] sm:$0xff] %v4979_v41  ;;  %v4981_v1 = vpop.permute.xlu0 %1710 }
 0x2d6   :  { %5315 = vst [vmem:[#allocation28_spill] sm:$0xff] %v4981_v1 }
 0x2d8   :  { %2238 = vmatmul.mubr.f32.gmra.mxu0 %v1587_v28  ;;  %v4983_v50 = vpop.permute.xlu1 %1825 }
 0x2d9   :  { %2742 = vmatprep.mubr.msk.f32.mxu0 %vm1933_vm1, %v1590_v54  ;;  %5316 = vst [vmem:[#allocation27_spill] sm:$0xff] %v4983_v50  ;;  %v4989_v31 = vpop.permute.xlu0 %1705 }
 0x2da   :  { %5318 = vst [vmem:[#allocation7_spill] sm:$0xff] %v4989_v31 }
 0x2dc   :  { %2243 = vmatmul.mubr.f32.gmra.mxu0 %v1589_v57  ;;  %v4995_v28 = vpop.permute.xlu1 %1820 }
 0x2dd   :  { %2743 = vmatprep.mubr.msk.f32.mxu0 %vm1933_vm1, %v1592_v44  ;;  %5320 = vst [vmem:[#allocation31_spill] sm:$0xff] %v4995_v28 }
 0x2e0   :  { %2248 = vmatmul.mubr.f32.gmra.mxu0 %v1591_v51 }
 0x2e1   :  { %2744 = vmatprep.mubr.msk.f32.mxu0 %vm1933_vm1, %v1594_v9  ;;  %v5001_v9 = vpop.permute.xlu0 %1700 }
 0x2e2   :  { %5322 = vst [vmem:[#allocation32_spill] sm:$0xff] %v5001_v9 }
 0x2e4   :  { %2253 = vmatmul.mubr.f32.gmra.mxu0 %v1593_v58 }
 0x2e5   :  { %2745 = vmatprep.mubr.msk.f32.mxu0 %vm1933_vm1, %v1596_v10 }
 0x2e8   :  { %2258 = vmatmul.mubr.f32.gmra.mxu0 %v1595_v2  ;;  %v5003_v2 = vpop.permute.xlu1 %1815 }
 0x2e9   :  { %2746 = vmatprep.mubr.msk.f32.mxu0 %vm1933_vm1, %v1598_v19  ;;  %5323 = vst [vmem:[#allocation33_spill] sm:$0xff] %v5003_v2 }
 0x2ec   :  { %2263 = vmatmul.mubr.f32.gmra.mxu0 %v1597_v34 }
 0x2ed   :  { %2747 = vmatprep.mubr.msk.f32.mxu0 %vm1933_vm1, %v1600_v47 }
 0x2f0   :  { %2268 = vmatmul.mubr.f32.gmra.mxu0 %v1599_v42 }
 0x2f1   :  { %2748 = vmatprep.mubr.msk.f32.mxu0 %vm1933_vm1, %v1602_v0  ;;  %v5009_v0 = vpop.permute.xlu0 %1695 }
 0x2f2   :  { %5325 = vst [vmem:[#allocation34_spill] sm:$0xff] %v5009_v0 }
 0x2f4   :  { %2273 = vmatmul.mubr.f32.gmra.mxu0 %v1601_v29 }
 0x2f5   :  { %2749 = vmatprep.mubr.msk.f32.mxu0 %vm1933_vm1, %v1604_v21 }
 0x2f8   :  { %2278 = vmatmul.mubr.f32.gmra.mxu0 %v1603_v12  ;;  %v5013_v12 = vpop.permute.xlu1 %1930 }
 0x2f9   :  { %2750 = vmatprep.mubr.msk.f32.mxu0 %vm1933_vm1, %v1606_v46  ;;  %5327 = vst [vmem:[#allocation20_spill] sm:$0xff] %v5013_v12 }
 0x2fc   :  { %2283 = vmatmul.mubr.f32.gmra.mxu0 %v1605_v43 }
 0x2fd   :  { %2751 = vmatprep.mubr.msk.f32.mxu0 %vm1933_vm1, %v1608_v18 }
 0x300   :  { %2288 = vmatmul.mubr.f32.gmra.mxu0 %v1607_v52 }
 0x301   :  { %2752 = vmatprep.mubr.msk.f32.mxu0 %vm1933_vm1, %v1610_v32  ;;  %v5017_v32 = vpop.permute.xlu0 %1810 }
 0x302   :  { %5329 = vst [vmem:[#allocation13_spill] sm:$0xff] %v5017_v32 }
 0x304   :  { %2293 = vmatmul.mubr.f32.gmra.mxu0 %v1609_v36 }
 0x305   :  { %2753 = vmatprep.mubr.msk.f32.mxu0 %vm1933_vm1, %v1612_v11 }
 0x308   :  { %2298 = vmatmul.mubr.f32.gmra.mxu0 %v1611_v26  ;;  %v5019_v26 = vpop.permute.xlu1 %1925 }
 0x309   :  { %2754 = vmatprep.mubr.msk.f32.mxu0 %vm1933_vm1, %v1614_v39 }
 0x30c   :  { %2303 = vmatmul.mubr.f32.gmra.mxu0 %v1613_v8 }
 0x30d   :  { %2755 = vmatprep.mubr.msk.f32.mxu0 %vm1933_vm1, %v1616_v27 }
 0x310   :  { %2308 = vmatmul.mubr.f32.gmra.mxu0 %v1615_v56 }
 0x34c   :  { %v4985_v4 = vpop.f32.mrf.mxu0  ;;  %v4987_v17 = vpop.f32.mrf.mxu1 }
 0x34d   :  { %5317 = vst [vmem:[#allocation29_spill] sm:$0xff] %v4985_v4 }
 0x34e   :  { %v2146_v48 = vpop.f32.mrf.mxu0  ;;  %v2316_v20 = vpop.f32.mrf.mxu1 }
 0x34f   :  { %v5023_v48 = vpop.permute.xlu0 %1805 }
 0x350   :  { %v4991_v60 = vpop.f32.mrf.mxu0  ;;  %v4993_v61 = vpop.f32.mrf.mxu1 }
 0x351   :  { %5319 = vst [vmem:[#allocation30_spill] sm:$0xff] %v4991_v60 }
 0x352   :  { %v2151_v54 = vpop.f32.mrf.mxu0  ;;  %v2321_v57 = vpop.f32.mrf.mxu1 }
 0x353   :  { %v5029_v57 = vpop.permute.xlu1 %1920 }
 0x354   :  { %v4997_v44 = vpop.f32.mrf.mxu0  ;;  %v4999_v51 = vpop.f32.mrf.mxu1 }
 0x355   :  { %5321 = vst [vmem:[#allocation22_spill] sm:$0xff] %v4997_v44 }
 0x356   :  { %v2156_v58 = vpop.f32.mrf.mxu0  ;;  %v2326_v10 = vpop.f32.mrf.mxu1 }
 0x358   :  { %v5005_v19 = vpop.f32.mrf.mxu0  ;;  %v5007_v34 = vpop.f32.mrf.mxu1 }
 0x359   :  { %5324 = vst [vmem:[#allocation24_spill] sm:$0xff] %v5005_v19 }
 0x35a   :  { %v2161_v47 = vpop.f32.mrf.mxu0  ;;  %v2331_v42 = vpop.f32.mrf.mxu1 }
 0x35c   :  { %v5011_v29 = vpop.f32.mrf.mxu0  ;;  %v2334_v21 = vpop.f32.mrf.mxu1 }
 0x35d   :  { %5326 = vst [vmem:[#allocation35_spill] sm:$0xff] %v5011_v29 }
 0x35e   :  { %v2166_v46 = vpop.f32.mrf.mxu0  ;;  %v2336_v43 = vpop.f32.mrf.mxu1 }
 0x35f   :  { %v5035_v46 = vpop.permute.xlu0 %1800 }
 0x360   :  { %v5015_v18 = vpop.f32.mrf.mxu0  ;;  %v2339_v52 = vpop.f32.mrf.mxu1 }
 0x361   :  { %5328 = vst [vmem:[#allocation11_spill] sm:$0xff] %v5015_v18  ;;  %v2340_v59 = vadd.f32 %v2339_v52, %v4899_v37 }
 0x362   :  { %v2171_v36 = vpop.f32.mrf.mxu0  ;;  %v2341_v11 = vpop.f32.mrf.mxu1 }
 0x363   :  { %v5037_v11 = vpop.permute.xlu1 %1915  ;;  %v5043_v4 = vpop.permute.xlu0 %1795  ;;  %v2422_v6 = vmul.f32 0.2, %v2340_v59 }
 0x364   :  { %v5021_v39 = vpop.f32.mrf.mxu0  ;;  %v2344_v8 = vpop.f32.mrf.mxu1 }
 0x365   :  { %5330 = vst [vmem:[#allocation21_spill] sm:$0xff] %v5021_v39 }
 0x366   :  { %v2176_v27 = vpop.f32.mrf.mxu0  ;;  %v2346_v56 = vpop.f32.mrf.mxu1 }
 0x367   :  { %v5047_v0 = vpop.permute.xlu1 %1910 }
 0x368   :  { %v5025_v20 = vpop.f32.mrf.mxu0  ;;  %v5027_v54 = vpop.f32.mrf.mxu1 }
 0x369   :  { %5331 = vst [vmem:[#allocation3_spill] sm:$0xff] %v5025_v20 }
 0x36a   :  { %v2181_v58 = vpop.f32.mrf.mxu0  ;;  %v2351_v10 = vpop.f32.mrf.mxu1 }
 0x36c   :  { %v5031_v47 = vpop.f32.mrf.mxu0  ;;  %v5033_v42 = vpop.f32.mrf.mxu1 }
 0x36e   :  { %v2186_v43 = vpop.f32.mrf.mxu0  ;;  %v2356_v36 = vpop.f32.mrf.mxu1 }
 0x36f   :  { %v5051_v36 = vpop.permute.xlu0 %1790 }
 0x370   :  { %v5039_v27 = vpop.f32.mrf.mxu0  ;;  %v5041_v56 = vpop.f32.mrf.mxu1 }
 0x372   :  { %v2191_v12 = vpop.f32.mrf.mxu0  ;;  %v2361_v32 = vpop.f32.mrf.mxu1 }
 0x373   :  { %v2504_v12 = vld [vmem:[%s5209_s7 + $0x8] sm:$0xff]  ;;  %v1906_v32 = vpop.permute.xlu1 %1905 }
 0x374   :  { %v2194_v58 = vpop.f32.mrf.mxu0  ;;  %v5045_v10 = vpop.f32.mrf.mxu1  ;;  %2770 = vmatprep.mubr.msk.f32.mxu1 %vm270_vm0, %v2504_v12  ;;  %v2330_v12 = vadd.f32 %v5007_v34, %v4928_v53  ;;  %v2325_v53 = vadd.f32 %v4999_v51, %v4943_v5 }
 0x376   :  { %v2196_v2 = vpop.f32.mrf.mxu0  ;;  %v2366_v60 = vpop.f32.mrf.mxu1 }
 0x377   :  { %v5059_v60 = vpop.permute.xlu0 %1785  ;;  %v1901_v29 = vpop.permute.xlu1 %1900 }
 0x378   :  { %v2199_v9 = vpop.f32.mrf.mxu0  ;;  %v5049_v43 = vpop.f32.mrf.mxu1 }
 0x37a   :  { %v2201_v28 = vpop.f32.mrf.mxu0  ;;  %v2371_v44 = vpop.f32.mrf.mxu1 }
 0x37b   :  { %v1781_v7 = vpop.permute.xlu0 %1780  ;;  %v1896_v38 = vpop.permute.xlu1 %1895 }
 0x37c   :  { %v2204_v31 = vpop.f32.mrf.mxu0  ;;  %v5057_v50 = vpop.f32.mrf.mxu1 }
 0x37e   :  { %v2206_v19 = vpop.f32.mrf.mxu0  ;;  %v2376_v2 = vpop.f32.mrf.mxu1 }
 0x37f   :  { %v2335_v19 = vadd.f32 %v2334_v21, %v4917_v24  ;;  %v2470_v21 = vmax.f32 %v2340_v59, %v2422_v6 }
 0x380   :  { %v2209_v1 = vpop.f32.mrf.mxu0  ;;  %v5061_v41 = vpop.f32.mrf.mxu1 }
 0x381   :  { %5332 = vst [vmem:[#allocation19_spill] sm:$0xff] %v5061_v41  ;;  %v2210_v39 = vadd.f32 %v2209_v1, %v4937_v35  ;;  %v2345_v41 = vadd.f32 %v2344_v8, %v1896_v38  ;;  %v2421_v24 = vmul.f32 0.2, %v2335_v19  ;;  %v5077_v35 = vadd.f32 %v4987_v17, %v4951_v33 }
 0x382   :  { %v2211_v28 = vpop.f32.mrf.mxu0  ;;  %v2381_v44 = vpop.f32.mrf.mxu1  ;;  %v2200_v38 = vadd.f32 %v2199_v9, %v4949_v14 }
 0x383   :  { %v2205_v28 = vadd.f32 %v2204_v31, %v4945_v62  ;;  %v2396_v1 = vmul.f32 0.2, %v2210_v39  ;;  %v1776_v31 = vpop.permute.xlu0 %1775  ;;  %v2469_v17 = vmax.f32 %v2335_v19, %v2421_v24 }
 0x384   :  { %v2214_v30 = vpop.f32.mrf.mxu0  ;;  %v2394_v14 = vmul.f32 0.2, %v2200_v38 }
 0x385   :  { %v2215_v18 = vadd.f32 %v2214_v30, %v4926_v49  ;;  %v2320_v49 = vadd.f32 %v4993_v61, %v4947_v25  ;;  %v2420_v30 = vmul.f32 0.2, %v2330_v12  ;;  %v2195_v25 = vadd.f32 %v2194_v58, %v4953_v16 }
 0x386   :  { %v2216_v2 = vpop.f32.mrf.mxu0  ;;  %v2395_v5 = vmul.f32 0.2, %v2205_v28  ;;  %v2444_v9 = vmax.f32 %v2210_v39, %v2396_v1 }
 0x387   :  { %v2397_v44 = vmul.f32 0.2, %v2215_v18  ;;  %v2418_v2 = vmul.f32 0.2, %v2320_v49  ;;  %v2468_v33 = vmax.f32 %v2330_v12, %v2420_v30 }
 0x388   :  { %v2219_v45 = vpop.f32.mrf.mxu0  ;;  %v2443_v58 = vmax.f32 %v2205_v28, %v2395_v5 }
 0x389   :  { %v2220_v37 = vadd.f32 %v2219_v45, %v4908_v23  ;;  %v2423_v23 = vmul.f32 0.2, %v2345_v41  ;;  %v2350_v45 = vadd.f32 %v5027_v54, %v1901_v29  ;;  %v2445_v51 = vmax.f32 %v2215_v18, %v2397_v44 }
 0x38a   :  { %v2221_v34 = vpop.f32.mrf.mxu0  ;;  %v2355_v29 = vadd.f32 %v5033_v42, %v1906_v32  ;;  %v2393_v54 = vmul.f32 0.2, %v2195_v25  ;;  %v2492_v39 = vmax.f32 %v2444_v9, %v2468_v33  ;;  %v2466_v42 = vmax.f32 %v2320_v49, %v2418_v2 }
 0x38b   :  { %v2398_v62 = vmul.f32 0.2, %v2220_v37  ;;  %v2419_v34 = vmul.f32 0.2, %v2325_v53  ;;  %v2471_v6 = vmax.f32 %v2345_v41, %v2423_v23  ;;  %v2424_v59 = vmul.f32 0.2, %v2350_v45 }
 0x38c   :  { %v2224_v61 = vpop.f32.mrf.mxu0  ;;  %v2493_v15 = vmax.f32 %v2445_v51, %v2469_v17  ;;  %v2425_v24 = vmul.f32 0.2, %v2355_v29 }
 0x38d   :  { %v2446_v52 = vmax.f32 %v2220_v37, %v2398_v62  ;;  %v2225_v8 = vadd.f32 %v2224_v61, %v1776_v31  ;;  %v2417_v37 = vmul.f32 0.2, %v5077_v35  ;;  %v2467_v12 = vmax.f32 %v2325_v53, %v2419_v34 }
 0x38e   :  { %v2226_v55 = vpop.f32.mrf.mxu0  ;;  %v2472_v32 = vmax.f32 %v2350_v45, %v2424_v59 }
 0x38f   :  { %v2494_v20 = vmax.f32 %v2446_v52, %v2470_v21  ;;  %v2399_v22 = vmul.f32 0.2, %v2225_v8  ;;  %v2442_v55 = vmax.f32 %v2200_v38, %v2394_v14  ;;  %v2491_v28 = vmax.f32 %v2443_v58, %v2467_v12 }
 0x390   :  { %v2229_v16 = vpop.f32.mrf.mxu0 }
 0x391   :  { %v2447_v18 = vmax.f32 %v2225_v8, %v2399_v22  ;;  %v2230_v44 = vadd.f32 %v2229_v16, %v1781_v7  ;;  %2526 = vmatpush1.msra.mxu1 %v2494_v20  ;;  %v2360_v22 = vadd.f32 %v5041_v56, %v5047_v0  ;;  %v2441_v20 = vmax.f32 %v2195_v25, %v2393_v54 }
 0x392   :  { %v2231_v19 = vpop.f32.mrf.mxu0  ;;  %2527 = vmatprep.subr.mxu1 %v5276_v63  ;;  %v2490_v49 = vmax.f32 %v2442_v55, %v2466_v42  ;;  %v2473_v0 = vmax.f32 %v2355_v29, %v2425_v24  ;;  %v2365_v56 = vadd.f32 %v5045_v10, %v5037_v11  ;;  %v2370_v10 = vadd.f32 %v5049_v43, %v5029_v57 }
 0x393   :  { %v5085_v30 = vmax.f32 %v2447_v18, %v2471_v6  ;;  %v2400_v41 = vmul.f32 0.2, %v2230_v44  ;;  %2528 = vmatpush1.msra.mxu1 %v2493_v15  ;;  %v2465_v15 = vmax.f32 %v5077_v35, %v2417_v37  ;;  %v2426_v23 = vmul.f32 0.2, %v2360_v22 }
 0x394   :  { %v2234_v7 = vpop.f32.mrf.mxu0  ;;  %2529 = vmatprep.subr.mxu1 %v5276_v63  ;;  %v2427_v51 = vmul.f32 0.2, %v2365_v56  ;;  %v2428_v9 = vmul.f32 0.2, %v2370_v10  ;;  %v2375_v6 = vadd.f32 %v5057_v50, %v5019_v26 }
 0x395   :  { %v2448_v53 = vmax.f32 %v2230_v44, %v2400_v41  ;;  %v2235_v1 = vadd.f32 %v2234_v7, %v5059_v60  ;;  %2530 = vmatpush1.msra.mxu1 %v2492_v39  ;;  %v2489_v60 = vmax.f32 %v2441_v20, %v2465_v15  ;;  %v2474_v11 = vmax.f32 %v2360_v22, %v2426_v23 }
 0x396   :  { %v2236_v38 = vpop.f32.mrf.mxu0  ;;  %2531 = vmatprep.subr.mxu1 %v5276_v63  ;;  %v2475_v17 = vmax.f32 %v2365_v56, %v2427_v51  ;;  %v2476_v58 = vmax.f32 %v2370_v10, %v2428_v9  ;;  %v2190_v56 = vadd.f32 %v5039_v27, %v4957_v13  ;;  %v5335_v51 = vld [vmem:[#allocation3_spill] sm:$0xff]  ;;  %v5338_v13 = vld [vmem:[#allocation17_spill] sm:$0xff] }
 0x397   :  { %v5093_v62 = vmax.f32 %v2448_v53, %v2472_v32  ;;  %v2401_v31 = vmul.f32 0.2, %v2235_v1  ;;  %2532 = vmatpush1.msra.mxu1 %v2491_v28  ;;  %v5339_v27 = vld [vmem:[#allocation21_spill] sm:$0xff] }
 0x398   :  { %v2239_v21 = vpop.f32.mrf.mxu0  ;;  %2533 = vmatprep.subr.mxu1 %v5276_v63 }
 0x399   :  { %v2449_v45 = vmax.f32 %v2235_v1, %v2401_v31  ;;  %v2240_v25 = vadd.f32 %v2239_v21, %v5051_v36  ;;  %2534 = vmatpush1.msra.mxu1 %v2490_v49 }
 0x39a   :  { %v2241_v61 = vpop.f32.mrf.mxu0  ;;  %2535 = vmatprep.subr.mxu1 %v5276_v63 }
 0x39b   :  { %v5100_v35 = vmax.f32 %v2449_v45, %v2473_v0  ;;  %v2402_v5 = vmul.f32 0.2, %v2240_v25  ;;  %2536 = vmatpush1.msra.mxu1 %v2489_v60  ;;  %v2185_v60 = vadd.f32 %v5031_v47, %v4961_v3 }
 0x39c   :  { %v2244_v52 = vpop.f32.mrf.mxu0  ;;  %2537 = vmatprep.subr.mxu1 %v5276_v63 }
 0x39d   :  { %v2450_v8 = vmax.f32 %v2240_v25, %v2402_v5  ;;  %v2245_v2 = vadd.f32 %v2244_v52, %v5043_v4  ;;  %v2429_v4 = vmul.f32 0.2, %v2375_v6  ;;  %v5333_v25 = vld [vmem:[#allocation15_spill] sm:$0xff]  ;;  %v5334_v5 = vld [vmem:[#allocation18_spill] sm:$0xff] }
 0x39e   :  { %v2246_v36 = vpop.f32.mrf.mxu0  ;;  %v2180_v52 = vadd.f32 %v5335_v51, %v5334_v5  ;;  %v5350_v5 = vld [vmem:[#allocation7_spill] sm:$0xff]  ;;  %v5351_v51 = vld [vmem:[#allocation22_spill] sm:$0xff] }
 0x39f   :  { %v5106_v34 = vmax.f32 %v2450_v8, %v2474_v11  ;;  %v2403_v33 = vmul.f32 0.2, %v2245_v2  ;;  %v2477_v50 = vmax.f32 %v2375_v6, %v2429_v4  ;;  %v2392_v11 = vmul.f32 0.2, %v2190_v56  ;;  %v5336_v8 = vld [vmem:[#allocation12_spill] sm:$0xff]  ;;  %v5340_v6 = vld [vmem:[#allocation14_spill] sm:$0xff] }
 0x3a0   :  { %v2249_v14 = vpop.f32.mrf.mxu0  ;;  %v5343_v4 = vld [vmem:[#allocation26_spill] sm:$0xff] }
 0x3a1   :  { %v2451_v59 = vmax.f32 %v2245_v2, %v2403_v33  ;;  %v2250_v29 = vadd.f32 %v2249_v14, %v5035_v46  ;;  %v5337_v33 = vld [vmem:[#allocation16_spill] sm:$0xff]  ;;  %v2175_v14 = vadd.f32 %v5339_v27, %v5338_v13  ;;  %v5355_v27 = vld [vmem:[#allocation33_spill] sm:$0xff] }
 0x3a2   :  { %v2251_v54 = vpop.f32.mrf.mxu0 }
 0x3a3   :  { %v5111_v16 = vmax.f32 %v2451_v59, %v2475_v17  ;;  %v2404_v57 = vmul.f32 0.2, %v2250_v29  ;;  %v5342_v54 = vld [vmem:[#allocation11_spill] sm:$0xff] }
 0x3a4   :  { %v2254_v43 = vpop.f32.mrf.mxu0 }
 0x3a5   :  { %v2452_v18 = vmax.f32 %v2250_v29, %v2404_v57  ;;  %v2255_v44 = vadd.f32 %v2254_v43, %v5023_v48  ;;  %v5341_v29 = vld [vmem:[#allocation23_spill] sm:$0xff]  ;;  %v2390_v43 = vmul.f32 0.2, %v2180_v52 }
 0x3a6   :  { %v2256_v37 = vpop.f32.mrf.mxu0  ;;  %v2170_v57 = vadd.f32 %v5342_v54, %v5341_v29  ;;  %v5358_v54 = vld [vmem:[#allocation13_spill] sm:$0xff] }
 0x3a7   :  { %v5114_v12 = vmax.f32 %v2452_v18, %v2476_v58  ;;  %v2405_v19 = vmul.f32 0.2, %v2255_v44  ;;  %v2440_v58 = vmax.f32 %v2190_v56, %v2392_v11  ;;  %v2438_v56 = vmax.f32 %v2180_v52, %v2390_v43  ;;  %v5353_v52 = vld [vmem:[#allocation32_spill] sm:$0xff] }
 0x3a8   :  { %v5116_v55 = vpop.f32.mrf.mxu0  ;;  %v2155_v11 = vadd.f32 %v5351_v51, %v5350_v5 }
 0x3a9   :  { %v2453_v26 = vmax.f32 %v2255_v44, %v2405_v19  ;;  %v2260_v43 = vadd.f32 %v5116_v55, %v5358_v54 }
 0x3aa   :  { %v2261_v39 = vpop.f32.mrf.mxu0 }
 0x3ab   :  { %v5118_v46 = vmax.f32 %v2453_v26, %v2477_v50  ;;  %v5344_v50 = vld [vmem:[#allocation25_spill] sm:$0xff]  ;;  %v5345_v26 = vld [vmem:[#allocation35_spill] sm:$0xff]  ;;  %v2406_v55 = vmul.f32 0.2, %v2260_v43 }
 0x3ac   :  { %v5120_v41 = vpop.f32.mrf.mxu0  ;;  %v2165_v39 = vadd.f32 %v5345_v26, %v5344_v50 }
 0x3ae   :  { %v2266_v42 = vpop.f32.mrf.mxu0 }
 0x3af   :  { %v2389_v42 = vmul.f32 0.2, %v2175_v14 }
 0x3b0   :  { %v2269_v32 = vpop.f32.mrf.mxu0 }
 0x3b2   :  { %v2271_v24 = vpop.f32.mrf.mxu0 }
 0x3b4   :  { %v2274_v22 = vpop.f32.mrf.mxu0 }
 0x3b6   :  { %v2276_v7 = vpop.f32.mrf.mxu0 }
 0x3b7   :  { %v5346_v7 = vld [vmem:[#allocation4_spill] sm:$0xff] }
 0x3b8   :  { %v2279_v20 = vpop.f32.mrf.mxu0 }
 0x3ba   :  { %v2281_v48 = vpop.f32.mrf.mxu0 }
 0x3bb   :  { %v2280_v48 = vadd.f32 %v2279_v20, %v5346_v7  ;;  %v5352_v20 = vld [vmem:[#allocation31_spill] sm:$0xff] }
 0x3bc   :  { %v2284_v28 = vpop.f32.mrf.mxu0 }
 0x3bd   :  { %v2285_v18 = vadd.f32 %v2284_v28, %v5343_v4 }
 0x3be   :  { %v2286_v53 = vpop.f32.mrf.mxu0 }
 0x3c0   :  { %v2289_v1 = vpop.f32.mrf.mxu0 }
 0x3c1   :  { %v2290_v3 = vadd.f32 %v2289_v1, %v5340_v6 }
 0x3c2   :  { %v2291_v38 = vpop.f32.mrf.mxu0 }
 0x3c3   :  { %v2412_v53 = vmul.f32 0.2, %v2290_v3 }
 0x3c4   :  { %v2294_v15 = vpop.f32.mrf.mxu0 }
 0x3c5   :  { %v2295_v2 = vadd.f32 %v2294_v15, %v5336_v8  ;;  %v5347_v15 = vld [vmem:[#allocation28_spill] sm:$0xff]  ;;  %v2410_v8 = vmul.f32 0.2, %v2280_v48 }
 0x3c6   :  { %v2296_v49 = vpop.f32.mrf.mxu0 }
 0x3c7   :  { %v2413_v44 = vmul.f32 0.2, %v2295_v2  ;;  %v5348_v49 = vld [vmem:[#allocation24_spill] sm:$0xff] }
 0x3c8   :  { %v2299_v31 = vpop.f32.mrf.mxu0 }
 0x3c9   :  { %v2300_v61 = vadd.f32 %v2299_v31, %v5333_v25  ;;  %v2160_v31 = vadd.f32 %v5348_v49, %v5347_v15 }
 0x3ca   :  { %v2301_v0 = vpop.f32.mrf.mxu0 }
 0x3cb   :  { %v2414_v47 = vmul.f32 0.2, %v2300_v61  ;;  %v2388_v0 = vmul.f32 0.2, %v2170_v57  ;;  %v2386_v13 = vmul.f32 0.2, %v2160_v31 }
 0x3cc   :  { %v2304_v21 = vpop.f32.mrf.mxu0 }
 0x3cd   :  { %v2305_v23 = vadd.f32 %v2304_v21, %v4959_v40  ;;  %v2391_v40 = vmul.f32 0.2, %v2185_v60  ;;  %v2462_v1 = vmax.f32 %v2300_v61, %v2414_v47  ;;  %v5349_v21 = vld [vmem:[#allocation27_spill] sm:$0xff]  ;;  %v2270_v61 = vadd.f32 %v2269_v32, %v5352_v20  ;;  %v5356_v47 = vld [vmem:[#allocation34_spill] sm:$0xff]  ;;  %v5357_v32 = vld [vmem:[#allocation29_spill] sm:$0xff] }
 0x3ce   :  { %v2306_v45 = vpop.f32.mrf.mxu0  ;;  %v2275_v28 = vadd.f32 %v2274_v22, %v5349_v21  ;;  %v2604_v20 = vld [vmem:[%s5210_s9] sm:$0x3] }
 0x3cf   :  { %v2415_v36 = vmul.f32 0.2, %v2305_v23  ;;  %v2439_v24 = vmax.f32 %v2185_v60, %v2391_v40  ;;  %v2411_v45 = vmul.f32 0.2, %v2285_v18  ;;  %v2387_v60 = vmul.f32 0.2, %v2165_v39 }
 0x3d0   :  { %v2309_v10 = vpop.f32.mrf.mxu0  ;;  %v2265_v40 = vadd.f32 %v5120_v41, %v5355_v27  ;;  %v2434_v41 = vmax.f32 %v2160_v31, %v2386_v13  ;;  %v2454_v31 = vmax.f32 %v2260_v43, %v2406_v55 }
 0x3d1   :  { %v2310_v17 = vadd.f32 %v2309_v10, %v5337_v33  ;;  %v2463_v37 = vmax.f32 %v2305_v23, %v2415_v36  ;;  %v2461_v23 = vmax.f32 %v2295_v2, %v2413_v44  ;;  %v2437_v10 = vmax.f32 %v2175_v14, %v2389_v42 }
 0x3d2   :  { %v2311_v9 = vpop.f32.mrf.mxu0  ;;  %v2460_v36 = vmax.f32 %v2290_v3, %v2412_v53  ;;  %v2486_v33 = vmax.f32 %v2438_v56, %v2462_v1  ;;  %v2436_v2 = vmax.f32 %v2170_v57, %v2388_v0  ;;  %v2459_v14 = vmax.f32 %v2285_v18, %v2411_v45  ;;  %v5359_v18 = vld [vmem:[#allocation20_spill] sm:$0xff] }
 0x3d3   :  { %v2416_v59 = vmul.f32 0.2, %v2310_v17  ;;  %v2487_v25 = vmax.f32 %v2439_v24, %v2463_v37  ;;  %v2409_v9 = vmul.f32 0.2, %v2275_v28  ;;  %v2485_v6 = vmax.f32 %v2437_v10, %v2461_v23  ;;  %v5360_v37 = vld [vmem:[#allocation19_spill] sm:$0xff]  ;;  %v2517_v23 = vpop.permute.xlu0 %2516 }
 0x3d4   :  { %v2385_v3 = vmul.f32 0.2, %v2155_v11  ;;  %v2435_v29 = vmax.f32 %v2165_v39, %v2387_v60  ;;  %v2408_v57 = vmul.f32 0.2, %v2270_v61  ;;  %v2484_v4 = vmax.f32 %v2436_v2, %v2460_v36 }
 0x3d5   :  { %v2464_v19 = vmax.f32 %v2310_v17, %v2416_v59  ;;  %v5354_v17 = vld [vmem:[#allocation30_spill] sm:$0xff]  ;;  %v2145_v59 = vadd.f32 %v5357_v32, %v5356_v47  ;;  %v2407_v50 = vmul.f32 0.2, %v2265_v40  ;;  %v2457_v26 = vmax.f32 %v2275_v28, %v2409_v9 }
 0x3d6   :  { %v2150_v22 = vadd.f32 %v5354_v17, %v5353_v52  ;;  %v2483_v42 = vmax.f32 %v2435_v29, %v2459_v14  ;;  %v2433_v24 = vmax.f32 %v2155_v11, %v2385_v3  ;;  %v2456_v7 = vmax.f32 %v2270_v61, %v2408_v57 }
 0x3d7   :  { %v2488_v38 = vmax.f32 %v2440_v58, %v2464_v19  ;;  %v2458_v58 = vmax.f32 %v2280_v48, %v2410_v8  ;;  %v2380_v19 = vadd.f32 %v5360_v37, %v5359_v18  ;;  %v2383_v39 = vmul.f32 0.2, %v2145_v59  ;;  %v2609_v61 = vpop.permute.xlu0 %2608 }
 0x3d8   :  { %v2384_v44 = vmul.f32 0.2, %v2150_v22  ;;  %v2481_v15 = vmax.f32 %v2433_v24, %v2457_v26 }
 0x3d9   :  { %2538 = vmatpush1.msra.mxu1 %v2488_v38  ;;  %v2482_v48 = vmax.f32 %v2434_v41, %v2458_v58  ;;  %v2430_v1 = vmul.f32 0.2, %v2380_v19  ;;  %v2455_v38 = vmax.f32 %v2265_v40, %v2407_v50  ;;  %v2431_v49 = vmax.f32 %v2145_v59, %v2383_v39 }
 0x3da   :  { %2539 = vmatprep.subr.mxu1 %v5276_v63  ;;  %v2432_v53 = vmax.f32 %v2150_v22, %v2384_v44 }
 0x3db   :  { %2540 = vmatpush1.msra.mxu1 %v2487_v25  ;;  %v2478_v56 = vmax.f32 %v2380_v19, %v2430_v1  ;;  %v2479_v21 = vmax.f32 %v2431_v49, %v2455_v38 }
 0x3dc   :  { %2541 = vmatprep.subr.mxu1 %v5276_v63  ;;  %v2480_v0 = vmax.f32 %v2432_v53, %v2456_v7 }
 0x3dd   :  { %2542 = vmatpush1.msra.mxu1 %v2486_v33  ;;  %v2502_v28 = vmax.f32 %v2454_v31, %v2478_v56 }
 0x3de   :  { %2543 = vmatprep.subr.mxu1 %v5276_v63 }
 0x3df   :  { %2544 = vmatpush1.msra.mxu1 %v2485_v6 }
 0x3e0   :  { %2545 = vmatprep.subr.mxu1 %v5276_v63 }
 0x3e1   :  { %2546 = vmatpush1.msra.mxu1 %v2484_v4 }
 0x3e2   :  { %2547 = vmatprep.subr.mxu1 %v5276_v63 }
 0x3e3   :  { %2548 = vmatpush1.msra.mxu1 %v2483_v42 }
 0x3e4   :  { %2549 = vmatprep.subr.mxu1 %v5276_v63 }
 0x3e5   :  { %2550 = vmatpush1.msra.mxu1 %v2482_v48 }
 0x3e6   :  { %2551 = vmatprep.subr.mxu1 %v5276_v63 }
 0x3e7   :  { %2552 = vmatpush1.msra.mxu1 %v2481_v15 }
 0x3e8   :  { %2553 = vmatprep.subr.mxu1 %v5276_v63 }
 0x3e9   :  { %2554 = vmatpush1.msra.mxu1 %v2480_v0 }
 0x3ea   :  { %2555 = vmatprep.subr.mxu1 %v5276_v63 }
 0x3eb   :  { %2556 = vmatpush1.msra.mxu1 %v2479_v21 }
 0x3ec   :  { %2573 = vmatprep.subr.mxu1 %v5276_v63 }
 0x3ed   :  { %2574 = vmatpush2.msra.mxu1 %v2502_v28 }
 0x3ee   :  { %2575 = vmatprep.subr.mxu1 %v5276_v63 }
 0x3ef   :  { %2576 = vmatpush2.msra.mxu1 %v5118_v46 }
 0x3f0   :  { %2577 = vmatprep.subr.mxu1 %v5276_v63 }
 0x3f1   :  { %2578 = vmatpush2.msra.mxu1 %v5114_v12  ;;  %v2503_v12 = vld [vmem:[%s5209_s7] sm:$0xff] }
 0x3f2   :  { %2579 = vmatprep.subr.mxu1 %v5276_v63 }
 0x3f3   :  { %2580 = vmatpush2.msra.mxu1 %v5111_v16  ;;  %v2506_v16 = vld [vmem:[%s5209_s7 + $0x18] sm:$0xff] }
 0x3f4   :  { %2581 = vmatprep.subr.mxu1 %v5276_v63 }
 0x3f5   :  { %2582 = vmatpush2.msra.mxu1 %v5106_v34  ;;  %v2512_v34 = vpop.permute.xlu1 %2511 }
 0x3f6   :  { %2583 = vmatprep.subr.mxu1 %v5276_v63 }
 0x3f7   :  { %2584 = vmatpush2.msra.mxu1 %v5100_v35 }
 0x3f8   :  { %2585 = vmatprep.subr.mxu1 %v5276_v63 }
 0x3f9   :  { %2586 = vmatpush2.msra.mxu1 %v5093_v62  ;;  %v2505_v62 = vld [vmem:[%s5209_s7 + $0x10] sm:$0xff] }
 0x3fa   :  { %2587 = vmatprep.subr.mxu1 %v5276_v63 }
 0x3fb   :  { %2588 = vmatpush2.msra.mxu1 %v5085_v30 }
 0x3fc   :  { %2590 = vmatmul.mubr.f32.vlgmr.msra.gmra.mxu1 %v2503_v12  ;;  %3068 = vmatprep.subr.mxu1 %v5276_v63 }
 0x3fd   :  { %2771 = vmatprep.mubr.msk.f32.mxu1 %vm270_vm0, %v2506_v16 }
 0x400   :  { %2595 = vmatmul.mubr.f32.gmra.mxu1 %v2505_v62 }
 0x401   :  { %3072 = vmatprep.mubr.msk.f32.mxu1 %vm3138_vm2, %v5276_v63 }
 0x4bc   :  { %v2591_v35 = vpop.f32.mrf.mxu1 }
 0x4bd   :  { %v2592_v45 = vadd.f32 %v2591_v35, %v2512_v34 }
 0x4be   :  { %v2593_v46 = vpop.f32.mrf.mxu1 }
 0x4bf   :  { %v2600_v51 = vmul.f32 0.2, %v2592_v45 }
 0x4c0   :  { %v2596_v25 = vpop.f32.mrf.mxu1 }
 0x4c1   :  { %v2597_v30 = vadd.f32 %v2596_v25, %v2517_v23  ;;  %v2602_v10 = vmax.f32 %v2592_v45, %v2600_v51 }
 0x4c2   :  { %v2598_v5 = vpop.f32.mrf.mxu1 }
 0x4c3   :  { %v2601_v11 = vmul.f32 0.2, %v2597_v30 }
 0x4c5   :  { %v2603_v60 = vmax.f32 %v2597_v30, %v2601_v11 }
 0x4c7   :  { %3069 = vmatpush3.msra.mxu1 %v2603_v60 }
 0x4c8   :  { %3070 = vmatprep.subr.mxu1 %v5276_v63 }
 0x4c9   :  { %3071 = vmatpush3.msra.mxu1 %v2602_v10 }
 0x4ca   :  { %3073 = vmatmul.mubr.msk.f32.vlgmr.msra.gmra.mxu1 %vm2611_vm3, %v2604_v20 }
 0x58a   :  { %v2681_v8 = vpop.f32.mrf.mxu1 }
 0x58b   :  { %v2682_v36 = vadd.f32 %v2681_v8, %v2609_v61 }
 0x58c   :  { %v3074_v33 = vpop.f32.mrf.mxu1 }
 0x58d   :  { %2685 = vst [vmem:[%s5211_s11] sm:$0x3] %v2682_v36 }

</bundles_post_ra>
